<compile_context>
chip_gen: v7x
topology: tpu7x:2x2x1
jax: 0.10.0
libtpu: 0.0.40
codegen_flags: <defaults>
</compile_context>

<pallas_src>
import functools

import jax
import jax.numpy as jnp
from jax.experimental import pallas as pl
from jax.experimental.pallas import tpu as pltpu

DIM = 3  # TNet(dim=3)


def _default_tiling():
    """Per-generation (tn_max, vmem_limit_bytes) defaults."""
    try:
        vmem_bytes = int(pltpu.get_tpu_info().vmem_capacity_bytes)
    except Exception:  # no query available -> conservative (v7x-safe) defaults
        vmem_bytes = 64 * 1024 * 1024
    if vmem_bytes >= 96 * 1024 * 1024:       # v5e / v6e: 128 MiB physical VMEM
        return 4096, 80 * 1024 * 1024
    return 2048, 48 * 1024 * 1024             # v7x: 64 MiB physical VMEM


# ----------------------------------------------------------------------------
# Stage 1: per-point MLP (fc1..fc3, no fc3 bias/ReLU) + running max over points.
# ----------------------------------------------------------------------------
def pointwise_kernel(x_ref, w1, b1, w2, b2, w3, pooled_ref, *,
                     n_points, dim, tn, tiles_per_split, maybe_padded):
    f32 = jnp.float32
    s_idx = pl.program_id(1)
    n_idx = pl.program_id(2)

    @pl.when(n_idx == 0)
    def _init():
        pooled_ref[...] = jnp.full(pooled_ref.shape, -jnp.inf, pooled_ref.dtype)

    x = x_ref[0].astype(f32)              # (tn, dim)
    w1f = w1[...].astype(f32)             # (dim, 64)

    # fc1: K = dim (= 3) contraction as VPU broadcast-FMAs (avoids a ~2%
    # utilization MXU matmul).  Python loop unrolls (dim is static).
    acc = x[:, 0:1] * w1f[0:1, :]
    for d in range(1, dim):
        acc = acc + x[:, d:d + 1] * w1f[d:d + 1, :]
    h = jnp.maximum(acc + b1[...], 0.0)                                # (tn, 64)

    # fc2 on the MXU, f32 accumulation; operands in the compute dtype.
    cd = w2.dtype
    h = jnp.maximum(
        jnp.dot(h.astype(cd), w2[...], preferred_element_type=f32) + b2[...],
        0.0)                                                           # (tn, 128)

    # fc3 WITHOUT bias/ReLU: relu(max_i z_i + b3) == max_i relu(z_i + b3)
    # (ReLU monotone, b3 per-column), applied once in stage 2.
    z = jnp.dot(h.astype(cd), w3[...], preferred_element_type=f32)     # (tn, 1024)

    t = s_idx * tiles_per_split + n_idx    # global points-tile index

    if maybe_padded:
        needs_mask = (t + 1) * tn > n_points

        @pl.when(needs_mask)
        def _masked_tile():
            row = t * tn + jax.lax.broadcasted_iota(jnp.int32, (tn, 1), 0)
            zm = jnp.where(row < n_points, z, -jnp.inf)
            pooled_ref[0] = jnp.maximum(pooled_ref[0],
                                        jnp.max(zm, axis=0, keepdims=True))

        @pl.when(jnp.logical_not(needs_mask))
        def _full_tile():
            pooled_ref[0] = jnp.maximum(pooled_ref[0],
                                        jnp.max(z, axis=0, keepdims=True))
    else:
        pooled_ref[0] = jnp.maximum(pooled_ref[0],
                                    jnp.max(z, axis=0, keepdims=True))


# ----------------------------------------------------------------------------
# Stage 2: hoisted fc3 epilogue + global MLP (fc4..fc6) over batch tiles.
# ----------------------------------------------------------------------------
def global_kernel(g_ref, b3, w4, b4, w5, b5, w6, b6, out_ref):
    f32 = jnp.float32
    cd = w4.dtype
    # Hoisted fc3 bias + ReLU (exact: ReLU monotone, b3 per-column constant).
    g = jnp.maximum(g_ref[...] + b3[...], 0.0)                         # (tb, 1024)
    h = jnp.maximum(
        jnp.dot(g.astype(cd), w4[...], preferred_element_type=f32) + b4[...],
        0.0)                                                           # (tb, 512)
    h = jnp.maximum(
        jnp.dot(h.astype(cd), w5[...], preferred_element_type=f32) + b5[...],
        0.0)                                                           # (tb, 256)
    # b6 already has the flattened identity folded in; w6/b6 are lane-padded.
    out = jnp.dot(h.astype(cd), w6[...], preferred_element_type=f32) + b6[...]
    out_ref[...] = out.astype(out_ref.dtype)                           # (tb, 128)


# ----------------------------------------------------------------------------
# Wrapper.
# ----------------------------------------------------------------------------
def tnet_forward(x, params, dim=DIM, *, tn_max=None, tb_max=256, n_splits=1,
                 compute_dtype=jnp.bfloat16, vmem_limit_bytes=None):
    B, N, D = x.shape
    assert D == dim
    w1, b1, w2, b2, w3, b3, w4, b4, w5, b5, w6, b6 = params

    f32 = jnp.float32
    cd = compute_dtype

    auto_tn, auto_vmem = _default_tiling()
    if tn_max is None:
        tn_max = auto_tn
    if vmem_limit_bytes is None:
        vmem_limit_bytes = auto_vmem

    # Pre-cast MXU weights so the DMA moves the compute dtype; biases and the
    # tiny fc1 weight (VPU path) stay f32.
    w2c, w3c = w2.astype(cd), w3.astype(cd)
    w4c, w5c = w4.astype(cd), w5.astype(cd)

    # Fold the identity into the fc6 bias and zero-pad fc6 to 128 output
    # columns so the stage-2 store is lane-dense (sliced back afterwards).
    nout = dim * dim
    out_cols = ((nout + 127) // 128) * 128
    b6_eff = b6 + jnp.eye(dim, dtype=f32).reshape(1, nout)
    w6_pad = jnp.zeros((w6.shape[0], out_cols), f32).at[:, :nout].set(w6).astype(cd)
    b6_pad = jnp.zeros((1, out_cols), f32).at[:, :nout].set(b6_eff)

    def _full(a):
        nd = a.ndim
        return pl.BlockSpec(a.shape, lambda *gi, _nd=nd: (0,) * _nd)

    # ---- Stage 1: per-point MLP + running max, tiled over points ----------
    tn = N if N <= tn_max else max(8, (tn_max // 8) * 8)
    total_tiles = pl.cdiv(N, tn)
    ns = max(1, min(n_splits, total_tiles))     # splits of the points range
    tps = pl.cdiv(total_tiles, ns)              # tiles per split
    maybe_padded = ns * tps * tn > N            # any tile can overhang N
    clamp_needed = ns * tps > total_tiles       # any tile index past the end
    last_tile = total_tiles - 1

    def x_map(b, s, n):
        t = s * tps + n
        if clamp_needed:
            t = jnp.minimum(t, last_tile)       # padded tiles re-read last block
        return (b, t, 0)

    pooled = pl.pallas_call(
        functools.partial(pointwise_kernel, n_points=N, dim=dim, tn=tn,
                          tiles_per_split=tps, maybe_padded=maybe_padded),
        out_shape=jax.ShapeDtypeStruct((B, ns, 1024), f32),
        grid=(B, ns, tps),
        in_specs=[pl.BlockSpec((1, tn, dim), x_map),
                  _full(w1), _full(b1),
                  _full(w2c), _full(b2),
                  _full(w3c)],
        out_specs=pl.BlockSpec((1, 1, 1024), lambda b, s, n: (b, s, 0)),
        compiler_params=pltpu.CompilerParams(
            dimension_semantics=("parallel", "parallel", "arbitrary"),
            vmem_limit_bytes=vmem_limit_bytes),
    )(x, w1, b1, w2c, b2, w3c)

    # Combine per-split partial maxima (no-op when ns == 1).
    pooled = jnp.max(pooled, axis=1)                                   # (B, 1024)

    # ---- Stage 2: global MLP over batch tiles ------------------------------
    tb = B if B <= tb_max else tb_max
    grid_b = pl.cdiv(B, tb)

    out = pl.pallas_call(
        global_kernel,
        out_shape=jax.ShapeDtypeStruct((B, out_cols), f32),
        grid=(grid_b,),
        in_specs=[pl.BlockSpec((tb, 1024), lambda i: (i, 0)),
                  _full(b3),
                  _full(w4c), _full(b4),
                  _full(w5c), _full(b5),
                  _full(w6_pad), _full(b6_pad)],
        out_specs=pl.BlockSpec((tb, out_cols), lambda i: (i, 0)),
        compiler_params=pltpu.CompilerParams(
            dimension_semantics=("parallel",),
            vmem_limit_bytes=32 * 1024 * 1024),
    )(pooled, b3, w4c, b4, w5c, b5, w6_pad, b6_pad)

    return out[:, :nout].reshape(B, dim, dim)


def init_params(key, dim=DIM):
    """Deterministic PyTorch-style Linear init: U(-1/sqrt(fan_in), 1/sqrt(fan_in))."""
    sizes = [(dim, 64), (64, 128), (128, 1024), (1024, 512), (512, 256),
             (256, dim * dim)]
    params = []
    for fan_in, fan_out in sizes:
        kw, kb, key = jax.random.split(key, 3)
        bound = 1.0 / (fan_in ** 0.5)
        w = jax.random.uniform(kw, (fan_in, fan_out), jnp.float32, -bound, bound)
        b = jax.random.uniform(kb, (1, fan_out), jnp.float32, -bound, bound)
        params += [w, b]
    return params


def tnet_ref(x, params, dim=DIM):
    """Pure-JAX reference mirroring the PyTorch forward."""
    w1, b1, w2, b2, w3, b3, w4, b4, w5, b5, w6, b6 = params
    h = jax.nn.relu(jnp.einsum("bnd,df->bnf", x, w1) + b1)
    h = jax.nn.relu(jnp.einsum("bnf,fg->bng", h, w2) + b2)
    h = jax.nn.relu(jnp.einsum("bnf,fg->bng", h, w3) + b3)
    g = jnp.max(h, axis=1)
    g = jax.nn.relu(g @ w4 + b4)
    g = jax.nn.relu(g @ w5 + b5)
    g = g @ w6 + b6
    g = g + jnp.eye(dim, dtype=jnp.float32).reshape(1, -1)
    return g.reshape(-1, dim, dim)


if __name__ == "__main__":
    key = jax.random.PRNGKey(0)
    k_x, k_p = jax.random.split(key)

    # Small shapes; N chosen non-divisible by the tile so the points tiling,
    # last-tile masking and the two-level split paths are all exercised.
    B, N = 2, 80
    x = jax.random.normal(k_x, (B, N, DIM), dtype=jnp.float32)
    params = init_params(k_p, DIM)

    ref = tnet_ref(x, params)

    # f32 weights, tiled points axis (3 tiles, last one partial).
    out_f32 = jax.block_until_ready(
        tnet_forward(x, params, tn_max=32, compute_dtype=jnp.float32))
    assert out_f32.shape == (B, DIM, DIM)
    assert jnp.allclose(out_f32, ref, rtol=1e-4, atol=1e-4), "f32 mismatch vs reference"

    # Two-way split of the points range (v7x second-TensorCore path).
    out_split = jax.block_until_ready(
        tnet_forward(x, params, tn_max=32, n_splits=2, compute_dtype=jnp.float32))
    assert jnp.allclose(out_split, ref, rtol=1e-4, atol=1e-4), "split mismatch vs reference"

    # Default path: bf16 MXU weights (f32 accumulation), tn = N, single split.
    out_bf16 = jax.block_until_ready(tnet_forward(x, params))
    assert jnp.allclose(out_bf16, ref, rtol=5e-2, atol=5e-2), "bf16 mismatch vs reference"

    print("KERNEL_OK")
</pallas_src>

<mosaic_0001>
module attributes {stable_mosaic.version = 11 : i64} {
  func.func @pointwise_kernel(%arg0: i32, %arg1: i32, %arg2: i32, %arg3: memref<1x32x3xf32, #tpu.memory_space<vmem>>, %arg4: memref<3x64xf32, #tpu.memory_space<vmem>>, %arg5: memref<1x64xf32, #tpu.memory_space<vmem>>, %arg6: memref<64x128xf32, #tpu.memory_space<vmem>>, %arg7: memref<1x128xf32, #tpu.memory_space<vmem>>, %arg8: memref<128x1024xf32, #tpu.memory_space<vmem>>, %arg9: memref<1x1x1024xf32, #tpu.memory_space<vmem>>) attributes {dimension_semantics = [#tpu.dimension_semantics<parallel>, #tpu.dimension_semantics<parallel>, #tpu.dimension_semantics<arbitrary>], iteration_bounds = array<i64: 2, 1, 3>, scalar_prefetch = 0 : i64, scratch_operands = 0 : i64, tpu.core_type = #tpu.core_type<tc>, window_params = [{transform_indices = @transform_0, window_bounds = array<i64: 1, 32, 3>}, {pipeline_mode = #tpu.pipeline_mode<synchronous>, transform_indices = @transform_1, window_bounds = array<i64: 3, 64>}, {pipeline_mode = #tpu.pipeline_mode<synchronous>, transform_indices = @transform_2, window_bounds = array<i64: 1, 64>}, {pipeline_mode = #tpu.pipeline_mode<synchronous>, transform_indices = @transform_3, window_bounds = array<i64: 64, 128>}, {pipeline_mode = #tpu.pipeline_mode<synchronous>, transform_indices = @transform_4, window_bounds = array<i64: 1, 128>}, {pipeline_mode = #tpu.pipeline_mode<synchronous>, transform_indices = @transform_5, window_bounds = array<i64: 128, 1024>}, {transform_indices = @transform_6, window_bounds = array<i64: 1, 1, 1024>}]} {
    %c0_i32 = arith.constant 0 : i32
    %0 = arith.cmpi eq, %arg2, %c0_i32 : i32
    %1 = arith.extui %0 : i1 to i32
    %c0_i32_0 = arith.constant 0 : i32
    %2 = arith.cmpi ne, %1, %c0_i32_0 : i32
    scf.if %2 {
      %cst_18 = arith.constant 0xFF800000 : f32
      %47 = vector.broadcast %cst_18 : f32 to vector<1x1x1024xf32>
      %c0_19 = arith.constant 0 : index
      %c0_20 = arith.constant 0 : index
      %c0_21 = arith.constant 0 : index
      %48 = vector.load %arg9[%c0_19, %c0_20, %c0_21] : memref<1x1x1024xf32, #tpu.memory_space<vmem>>, vector<1x1x1024xf32>
      tpu.vector_store %arg9[%c0_19, %c0_20, %c0_21], %47 {strides = array<i32>} : memref<1x1x1024xf32, #tpu.memory_space<vmem>>, vector<1x1x1024xf32>,
    } else {
    }
    %c0 = arith.constant 0 : index
    %c0_1 = arith.constant 0 : index
    %c0_2 = arith.constant 0 : index
    %3 = vector.load %arg3[%c0, %c0_1, %c0_2] : memref<1x32x3xf32, #tpu.memory_space<vmem>>, vector<1x32x3xf32>
    %4 = vector.shape_cast %3 : vector<1x32x3xf32> to vector<32x3xf32>
    %c0_3 = arith.constant 0 : index
    %c0_4 = arith.constant 0 : index
    %5 = vector.load %arg4[%c0_3, %c0_4] : memref<3x64xf32, #tpu.memory_space<vmem>>, vector<3x64xf32>
    %6 = vector.extract_strided_slice %4 {offsets = [0, 0], sizes = [32, 1], strides = [1, 1]} : vector<32x3xf32> to vector<32x1xf32>
    %7 = vector.extract_strided_slice %5 {offsets = [0, 0], sizes = [1, 64], strides = [1, 1]} : vector<3x64xf32> to vector<1x64xf32>
    %8 = vector.broadcast %6 : vector<32x1xf32> to vector<32x64xf32>
    %9 = vector.broadcast %7 : vector<1x64xf32> to vector<32x64xf32>
    %10 = arith.mulf %8, %9 : vector<32x64xf32>
    %11 = vector.extract_strided_slice %4 {offsets = [0, 1], sizes = [32, 1], strides = [1, 1]} : vector<32x3xf32> to vector<32x1xf32>
    %12 = vector.extract_strided_slice %5 {offsets = [1, 0], sizes = [1, 64], strides = [1, 1]} : vector<3x64xf32> to vector<1x64xf32>
    %13 = vector.broadcast %11 : vector<32x1xf32> to vector<32x64xf32>
    %14 = vector.broadcast %12 : vector<1x64xf32> to vector<32x64xf32>
    %15 = arith.mulf %13, %14 : vector<32x64xf32>
    %16 = arith.addf %10, %15 : vector<32x64xf32>
    %17 = vector.extract_strided_slice %4 {offsets = [0, 2], sizes = [32, 1], strides = [1, 1]} : vector<32x3xf32> to vector<32x1xf32>
    %18 = vector.extract_strided_slice %5 {offsets = [2, 0], sizes = [1, 64], strides = [1, 1]} : vector<3x64xf32> to vector<1x64xf32>
    %19 = vector.broadcast %17 : vector<32x1xf32> to vector<32x64xf32>
    %20 = vector.broadcast %18 : vector<1x64xf32> to vector<32x64xf32>
    %21 = arith.mulf %19, %20 : vector<32x64xf32>
    %22 = arith.addf %16, %21 : vector<32x64xf32>
    %c0_5 = arith.constant 0 : index
    %c0_6 = arith.constant 0 : index
    %23 = vector.load %arg5[%c0_5, %c0_6] : memref<1x64xf32, #tpu.memory_space<vmem>>, vector<1x64xf32>
    %24 = vector.broadcast %23 : vector<1x64xf32> to vector<32x64xf32>
    %25 = arith.addf %22, %24 : vector<32x64xf32>
    %cst = arith.constant 0.000000e+00 : f32
    %26 = vector.broadcast %cst : f32 to vector<32x64xf32>
    %27 = arith.maximumf %25, %26 : vector<32x64xf32>
    %c0_7 = arith.constant 0 : index
    %c0_8 = arith.constant 0 : index
    %28 = vector.load %arg6[%c0_7, %c0_8] : memref<64x128xf32, #tpu.memory_space<vmem>>, vector<64x128xf32>
    %cst_9 = arith.constant dense<0.000000e+00> : vector<32x128xf32>
    %29 = tpu.matmul %27, %28, %cst_9 {dimension_numbers = #tpu.dot_dimension_numbers<[1], [0], [0], [1], [0, 0, 1, 1], [], []>} : vector<32x64xf32>, vector<64x128xf32>, vector<32x128xf32> -> vector<32x128xf32>
    %c0_10 = arith.constant 0 : index
    %c0_11 = arith.constant 0 : index
    %30 = vector.load %arg7[%c0_10, %c0_11] : memref<1x128xf32, #tpu.memory_space<vmem>>, vector<1x128xf32>
    %31 = vector.broadcast %30 : vector<1x128xf32> to vector<32x128xf32>
    %32 = arith.addf %29, %31 : vector<32x128xf32>
    %cst_12 = arith.constant 0.000000e+00 : f32
    %33 = vector.broadcast %cst_12 : f32 to vector<32x128xf32>
    %34 = arith.maximumf %32, %33 : vector<32x128xf32>
    %c0_13 = arith.constant 0 : index
    %c0_14 = arith.constant 0 : index
    %35 = vector.load %arg8[%c0_13, %c0_14] : memref<128x1024xf32, #tpu.memory_space<vmem>>, vector<128x1024xf32>
    %cst_15 = arith.constant dense<0.000000e+00> : vector<32x1024xf32>
    %36 = tpu.matmul %34, %35, %cst_15 {dimension_numbers = #tpu.dot_dimension_numbers<[1], [0], [0], [1], [0, 0, 1, 1], [], []>} : vector<32x128xf32>, vector<128x1024xf32>, vector<32x1024xf32> -> vector<32x1024xf32>
    %c3_i32 = arith.constant 3 : i32
    %37 = arith.muli %arg1, %c3_i32 : i32
    %38 = arith.addi %37, %arg2 : i32
    %c1_i32 = arith.constant 1 : i32
    %39 = arith.addi %38, %c1_i32 : i32
    %c32_i32 = arith.constant 32 : i32
    %40 = arith.muli %39, %c32_i32 : i32
    %c80_i32 = arith.constant 80 : i32
    %41 = arith.cmpi sgt, %40, %c80_i32 : i32
    %42 = arith.extui %41 : i1 to i32
    %c0_i32_16 = arith.constant 0 : i32
    %43 = arith.cmpi ne, %42, %c0_i32_16 : i32
    scf.if %43 {
      %c32_i32_18 = arith.constant 32 : i32
      %47 = arith.muli %38, %c32_i32_18 : i32
      %48 = tpu.iota {dimensions = array<i32: 0>} : vector<32x1xi32>
      %49 = vector.broadcast %47 : i32 to vector<32x1xi32>
      %50 = arith.addi %49, %48 : vector<32x1xi32>
      %c80_i32_19 = arith.constant 80 : i32
      %51 = vector.broadcast %c80_i32_19 : i32 to vector<32x1xi32>
      %52 = arith.cmpi slt, %50, %51 : vector<32x1xi32>
      %cst_20 = arith.constant 0xFF800000 : f32
      %53 = vector.shape_cast %52 : vector<32x1xi1> to vector<32x1xi1>
      %54 = vector.broadcast %53 : vector<32x1xi1> to vector<32x1024xi1>
      %55 = vector.broadcast %cst_20 : f32 to vector<32x1024xf32>
      %56 = arith.select %54, %36, %55 : vector<32x1024xi1>, vector<32x1024xf32>
      %c0_21 = arith.constant 0 : index
      %c0_22 = arith.constant 0 : index
      %c0_23 = arith.constant 0 : index
      %57 = vector.load %arg9[%c0_21, %c0_22, %c0_23] : memref<1x1x1024xf32, #tpu.memory_space<vmem>>, vector<1x1x1024xf32>
      %58 = vector.shape_cast %57 : vector<1x1x1024xf32> to vector<1x1024xf32>
      %cst_24 = arith.constant dense<0xFF800000> : vector<1024xf32>
      %59 = vector.multi_reduction <maximumf>, %56, %cst_24 [0] : vector<32x1024xf32> to vector<1024xf32>
      %60 = vector.shape_cast %59 : vector<1024xf32> to vector<1x1024xf32>
      %61 = arith.maximumf %58, %60 : vector<1x1024xf32>
      %c0_25 = arith.constant 0 : index
      %c0_26 = arith.constant 0 : index
      %c0_27 = arith.constant 0 : index
      %62 = vector.load %arg9[%c0_25, %c0_26, %c0_27] : memref<1x1x1024xf32, #tpu.memory_space<vmem>>, vector<1x1x1024xf32>
      %63 = vector.shape_cast %62 : vector<1x1x1024xf32> to vector<1x1024xf32>
      %64 = vector.shape_cast %61 : vector<1x1024xf32> to vector<1x1x1024xf32>
      tpu.vector_store %arg9[%c0_25, %c0_26, %c0_27], %64 {strides = array<i32>} : memref<1x1x1024xf32, #tpu.memory_space<vmem>>, vector<1x1x1024xf32>,
    } else {
    }
    %true = arith.constant true
    %44 = arith.xori %41, %true : i1
    %45 = arith.extui %44 : i1 to i32
    %c0_i32_17 = arith.constant 0 : i32
    %46 = arith.cmpi ne, %45, %c0_i32_17 : i32
    scf.if %46 {
      %c0_18 = arith.constant 0 : index
      %c0_19 = arith.constant 0 : index
      %c0_20 = arith.constant 0 : index
      %47 = vector.load %arg9[%c0_18, %c0_19, %c0_20] : memref<1x1x1024xf32, #tpu.memory_space<vmem>>, vector<1x1x1024xf32>
      %48 = vector.shape_cast %47 : vector<1x1x1024xf32> to vector<1x1024xf32>
      %cst_21 = arith.constant dense<0xFF800000> : vector<1024xf32>
      %49 = vector.multi_reduction <maximumf>, %36, %cst_21 [0] : vector<32x1024xf32> to vector<1024xf32>
      %50 = vector.shape_cast %49 : vector<1024xf32> to vector<1x1024xf32>
      %51 = arith.maximumf %48, %50 : vector<1x1024xf32>
      %c0_22 = arith.constant 0 : index
      %c0_23 = arith.constant 0 : index
      %c0_24 = arith.constant 0 : index
      %52 = vector.load %arg9[%c0_22, %c0_23, %c0_24] : memref<1x1x1024xf32, #tpu.memory_space<vmem>>, vector<1x1x1024xf32>
      %53 = vector.shape_cast %52 : vector<1x1x1024xf32> to vector<1x1024xf32>
      %54 = vector.shape_cast %51 : vector<1x1024xf32> to vector<1x1x1024xf32>
      tpu.vector_store %arg9[%c0_22, %c0_23, %c0_24], %54 {strides = array<i32>} : memref<1x1x1024xf32, #tpu.memory_space<vmem>>, vector<1x1x1024xf32>,
    } else {
    }
    return
  }
  func.func @transform_0(%arg0: i32, %arg1: i32, %arg2: i32) -> (i32, i32, i32) {
    %c3_i32 = arith.constant 3 : i32
    %0 = arith.muli %arg1, %c3_i32 : i32
    %1 = arith.addi %0, %arg2 : i32
    %c0_i32 = arith.constant 0 : i32
    %c0_i32_0 = arith.constant 0 : i32
    return %arg0, %1, %c0_i32 : i32, i32, i32
  }
  func.func @transform_1(%arg0: i32, %arg1: i32, %arg2: i32) -> (i32, i32) {
    %c0_i32 = arith.constant 0 : i32
    %c0_i32_0 = arith.constant 0 : i32
    %c0_i32_1 = arith.constant 0 : i32
    return %c0_i32, %c0_i32_0 : i32, i32
  }
  func.func @transform_2(%arg0: i32, %arg1: i32, %arg2: i32) -> (i32, i32) {
    %c0_i32 = arith.constant 0 : i32
    %c0_i32_0 = arith.constant 0 : i32
    %c0_i32_1 = arith.constant 0 : i32
    return %c0_i32, %c0_i32_0 : i32, i32
  }
  func.func @transform_3(%arg0: i32, %arg1: i32, %arg2: i32) -> (i32, i32) {
    %c0_i32 = arith.constant 0 : i32
    %c0_i32_0 = arith.constant 0 : i32
    %c0_i32_1 = arith.constant 0 : i32
    return %c0_i32, %c0_i32_0 : i32, i32
  }
  func.func @transform_4(%arg0: i32, %arg1: i32, %arg2: i32) -> (i32, i32) {
    %c0_i32 = arith.constant 0 : i32
    %c0_i32_0 = arith.constant 0 : i32
    %c0_i32_1 = arith.constant 0 : i32
    return %c0_i32, %c0_i32_0 : i32, i32
  }
  func.func @transform_5(%arg0: i32, %arg1: i32, %arg2: i32) -> (i32, i32) {
    %c0_i32 = arith.constant 0 : i32
    %c0_i32_0 = arith.constant 0 : i32
    %c0_i32_1 = arith.constant 0 : i32
    return %c0_i32, %c0_i32_0 : i32, i32
  }
  func.func @transform_6(%arg0: i32, %arg1: i32, %arg2: i32) -> (i32, i32, i32) {
    %c0_i32 = arith.constant 0 : i32
    %c0_i32_0 = arith.constant 0 : i32
    return %arg0, %arg1, %c0_i32 : i32, i32, i32
  }
}

</mosaic_0001>

<bundles_post_ra>
// kernel: tpu_custom_call.1
= control target key start
LH: loop header
LB: loop body
LE: loop exit
PB: predicated region body
PF: predicated region fallthrough
CT: control target
= control target key end

     0   :  { %11 = vsyncpa [#allocation3], 0  ;;  %s2410_s0 = inlined_call_operand.vmem [shape: f32[2,80,3], index: 0, kind: input, shape index: {}]   ;;  %s2411_s1 = inlined_call_operand.vmem [shape: f32[3,64], index: 1, kind: input, shape index: {}]   ;;  %s2412_s2 = inlined_call_operand.vmem [shape: f32[1,64], index: 2, kind: input, shape index: {}]   ;;  %s2413_s3 = inlined_call_operand.vmem [shape: f32[64,128], index: 3, kind: input, shape index: {}]   ;;  %s2414_s4 = inlined_call_operand.vmem [shape: f32[1,128], index: 4, kind: input, shape index: {}]   ;;  %s2415_s5 = inlined_call_operand.hbm [shape: f32[128,1024], index: 5, kind: input, shape index: {}]   ;;  %s2416_s6 = inlined_call_operand.hbm [shape: f32[2,1,1024], index: 6, kind: output, shape index: {}]  }
   0x1   :  { %12 = vsyncpa [#allocation4], 0 }
   0x2   :  { %14 = vsyncpa [#allocation4 + $0x1], 0  ;;  %s1974_s21 = smov 0   ;;  %s1976_s22 = smov 0  }
   0x3   :  { %s1978_s23 = smov 0   ;;  %s1980_s24 = smov 0  }
   0x4   :  { %s1982_s25 = smov 0   ;;  %s1984_s26 = smov 0  }
   0x5   :  { %s1986_s27 = smov 0   ;;  %s1988_s28 = smov 0  }
   0x6 LB: > { %s1490_s29 = sadd.s32 4294967295, %s1926_s28   ;;  %s1491_s30 = sadd.s32 4294967294, %s1926_s28   ;;  %s1926_s28 = sphi %s1988_s28, %s20_s28   ;;  %s1922_s27 = sphi %s1986_s27, %s2505_s27   ;;  %s1918_s26 = sphi %s1984_s26, %s2504_s26   ;;  %s1914_s25 = sphi %s1982_s25, %s2503_s25   ;;  %s1910_s24 = sphi %s1980_s24, %s2502_s24   ;;  %s1906_s23 = sphi %s1978_s23, %s2501_s23   ;;  %s1902_s22 = sphi %s1976_s22, %s2500_s22   ;;  %s1898_s21 = sphi %s1974_s21, %s2499_s21  }
   0x7   : > { %s32_s7 = sadd.s32 1, %s1918_s26  ;;  %s39_s8 = sadd.s32 1, %s1922_s27 }
   0x8   : > { %p33_p0 = scmp.ge.s32.totalorder %s32_s7, 3  ;;  %s185_s9 = sadd.s32 1, %s1906_s23 }
   0x9   : > { %p195_p1 = scmp.ne.s32.totalorder %s1906_s23, %s1902_s22  ;;  %p196_p2 = scmp.eq.s32.totalorder %s1490_s29, 5 }
   0xa   : > { %s2507_s7 = smov (%p33_p0, %s32_s7), 0  ;;  %s2509_s8 = smov (!%p33_p0, %s39_s8), %s1922_s27 }
   0xb   : > { %p2024_p3 = por %p196_p2, %p195_p1  ;;  %p201_p4 = scmp.ne.s32.totalorder %s1902_s22, %s1898_s21 }
   0xc   : > { %p41_p5 = scmp.ge.s32.totalorder %s2509_s8, 2  ;;  %p202_p6 = scmp.eq.s32.totalorder %s1491_s30, 5 }
   0xd   : > { %s2444_s10 = scalar_select %p2024_p3, 1, 0 }
   0xe   : > { %p1492_p7 = scmp.ge.s32.totalorder %s1926_s28, 1  ;;  %p209_p8 = scmp.lt.s32.totalorder %s1926_s28, 7 }
   0xf   : > { %s2511_s8 = smov (%p41_p5, %s2509_s8), 0  ;;  %p2034_p9 = por %p202_p6, %p201_p4 }
  0x10   : > { %2445 = sst [smem:[#allocation8_spill]] %s2511_s8  ;;  %p2038_p10 = pnand %p1492_p7, %p209_p8 }
  0x11   : > { %s2446_s11 = scalar_select %p2034_p9, 1, 0 }
  0x12   : > { %s2447_s12 = scalar_select %p2038_p10, 1, 0 }
  0x13   : > { %s180_s13 = ssub.s32 %s1922_s27, %s2511_s8  ;;  %p1704_p12 = pneg %p2038_p10 }
  0x14   : > { %p183_p11 = scmp.eq.s32.totalorder %s180_s13, 0  ;;  %p2046_p13 = scmp.eq.s32.totalorder %s1490_s29, 0 }
  0x15   : > { %s1928_s16 = smov [#allocation2]   ;;  %s1800_s30 = scalar_lea.hbm %s2415_s5, 16384 }
  0x16   : > { %s2448_s14 = scalar_select %p2046_p13, 1, 0 }
  0x17   : > { %s2051_s15 = scalar_select %p183_p11, %s1906_s23, %s185_s9  }
  0x18   : > { %s233_s17 = sshll.u32 %s1928_s16, 4  ;;  %p2055_p0 = pnand %p2046_p13, %p1704_p12  ;;  %s234_s17 = int_to_ptr.vmem [resolvable:$true] %s233_s17 }
  0x19   : > { %p1801_p1 = scmp.ne.s32.totalorder %s2415_s5, %s1800_s30  ;;  %p1807_p6 = scmp.lt.u32.totalorder %s1800_s30, %s2415_s5 }
  0x1a   : > { %p1802_p2 = pneg %p2055_p0 }
  0x1c   : > { %p1803_p4 = pnand %p1802_p2, %p1801_p1 }
  0x1e   : > { %p1804_p5 = pneg %p1803_p4 }
  0x20   : > { %p1809_p7 = pnand %p1807_p6, %p1804_p5 }
  0x22   : > { %1812 = shalt.err (!%p1809_p7)
}
  0x23   : > { %s1813_s8 = scalar_lea.vmem %s234_s17, 16384  ;;  %p1821_p9 = scmp.lt.s32.totalorder %s234_s17, %s234_s17 }
  0x24   : > { %p1814_p8 = scmp.ne.s32.totalorder %s234_s17, %s1813_s8  ;;  %p1822_p3 = scmp.lt.s32.totalorder %s1813_s8, %s1813_s8 }
  0x26   : > { %p1816_p11 = pnand %p1814_p8, %p1802_p2  ;;  %p1823_p13 = por %p1822_p3, %p1821_p9 }
  0x28   : > { %p1817_p12 = pneg %p1816_p11 }
  0x2a   : > { %p1824_p10 = pnand %p1823_p13, %p1817_p12 }
  0x2c   : > { %1827 = shalt.err (!%p1824_p10)
}
  0x2d   : > { %s1929_s19 = smov 1024   ;;  %s1930_s20 = smov 64  }
  0x2e   : > { %1707 = dma.hbm_to_vmem [thread:$0]  (!%p2055_p0), %s2415_s5, 16384, %s234_s17, [#allocation3], %s1929_s19, %s1929_s19, %s1930_s20  }
  0x2f   : > { %p2450_p1 = scmp.ne.s32.totalorder %s2447_s12, 0 }
  0x31   : > { %274 = sbr.rel (%p2450_p1) target bundleno = 787 (0x313), region = 44 }
  0x38   : > { %p2451_p4 = scmp.ne.s32.totalorder %s2448_s14, 0 }
  0x3a   : > { %1889 = dma.done.wait (%p2451_p4), [#allocation3], 16384  }
  0x3b   : > { %1891 = vsyncadd (%p2451_p4), [#allocation3], 4294950912  ;;  %s311_s8 = sand.u32 1, %s1902_s22   ;;  %s1498_s18 = sshll.u32 %s1910_s24, 2 }
  0x3c   : > { %s1497_s30 = sshll.u32 %s311_s8, 3  ;;  %p321_p3 = scmp.lt.s32.totalorder %s1914_s25, 1 }
  0x3d   : > { %p323_p9 = scmp.lt.s32.totalorder %s1498_s18, 9  ;;  %s2092_s29 = scalar_lea.vmem [#allocation5], %s1497_s30 }
  0x3e   : > { %s322_s17 = scalar_select %p321_p3, %s1914_s25, 1 }
  0x3f   : > { %s2513_s18 = smov (!%p323_p9, %s1498_s18), 9  ;;  %p1500_p10 = scmp.ne.s32.totalorder %s1910_s24, 0 }
  0x40   : > { %s1697_s12 = smul.u32 10, %s322_s17  ;;  %v1931_v0 = vmov (!%p1500_p10), -inf  }
  0x41   : > { %339 = sbr.rel (%p1500_p10) target bundleno = 72 (0x48), region = 52  ;;  %340 = vst [vmem:[%s2092_s29] sm:$0xff] (!%p1500_p10), %v1931_v0 }
  0x42   : > { %s326_s9 = sadd.s32 %s1697_s12, %s2513_s18 }
  0x43   : > { %s1499_s16 = sshll.u32 %s326_s9, 3 }
  0x44   : > { %s2090_s14 = scalar_lea.vmem %s2410_s0, %s1499_s16 }
  0x48 PF: > { %v342_v1 = vld [vmem:[%s2090_s14 + $0x8] sm:$0xff]  ;;  %v341_v2 = vld [vmem:[%s2090_s14] sm:$0xff]  ;;  %v1932_v3 = vmov 0   ;;  %v1933_v7 = vmov 1   ;;  %v447_v8 = vld [vmem:[%s2413_s3 + $0x10] sm:$0xff]  ;;  %v1934_v13 = vmov 2  }
  0x49   : > { %1791 = vset.pattern.permute.xlu1 %v1932_v3  ;;  %1789 = vset.pattern.permute.xlu0 %v1932_v3  ;;  %v445_v4 = vld [vmem:[%s2413_s3] sm:$0xff]  ;;  %v446_v5 = vld [vmem:[%s2413_s3 + $0x8] sm:$0xff]  ;;  %v448_v9 = vld [vmem:[%s2413_s3 + $0x18] sm:$0xff]  ;;  %vm460_vm0 = vcmask 523264   ;;  %s1516_s17 = sshll.u32 %s1910_s24, 5 }
  0x4a   : > { %353 = vperm.xlu1 %1791, %v342_v1   ;;  %348 = vperm.xlu0 %1789, %v341_v2   ;;  %v1553_v6 = vpack.c.bf16 %v446_v5, %v445_v4  ;;  %v1557_v10 = vpack.c.bf16 %v448_v9, %v447_v8  ;;  %v449_v11 = vld [vmem:[%s2413_s3 + $0x20] sm:$0xff]  ;;  %v450_v12 = vld [vmem:[%s2413_s3 + $0x28] sm:$0xff]  ;;  %v343_v15 = vld [vmem:[%s2090_s14 + $0x10] sm:$0xff]  ;;  %s2185_s12 = sadd.s32 32, %s1516_s17 }
  0x4b   : > { %v1561_v14 = vpack.c.bf16 %v450_v12, %v449_v11  ;;  %v344_v16 = vld [vmem:[%s2090_s14 + $0x18] sm:$0xff]  ;;  %v451_v17 = vld [vmem:[%s2413_s3 + $0x30] sm:$0xff]  ;;  %v563_v20 = vld [vmem:[#allocation2 + $0x8] sm:$0xff]  ;;  %p1508_p13 = scmp.le.s32.totalorder %s2185_s12, 80 }
  0x4c   : > { %1554 = vmatprep.subr.bf16.mxu0 %v1553_v6  ;;  %v452_v18 = vld [vmem:[%s2413_s3 + $0x38] sm:$0xff]  ;;  %v571_v21 = vld [vmem:[#allocation2 + $0x48] sm:$0xff]  ;;  %v562_v25 = vld [vmem:[#allocation2] sm:$0xff] }
  0x4d   : > { %1556 = vmatpush3.bf16.msra.mxu0 %v1553_v6  ;;  %v1565_v19 = vpack.c.bf16 %v452_v18, %v451_v17  ;;  %v565_v22 = vld [vmem:[#allocation2 + $0x18] sm:$0xff]  ;;  %v1569_v23 = vpack.c.bf16 %v571_v21, %v563_v20  ;;  %v570_v26 = vld [vmem:[#allocation2 + $0x40] sm:$0xff]  ;;  %v579_v29 = vld [vmem:[#allocation2 + $0x88] sm:$0xff] }
  0x4e   : > { %1792 = vset.pattern.permute.xlu1 %v1933_v7  ;;  %1790 = vset.pattern.permute.xlu0 %v1933_v7  ;;  %v573_v24 = vld [vmem:[#allocation2 + $0x58] sm:$0xff]  ;;  %v1571_v28 = vpack.c.bf16 %v570_v26, %v562_v25  ;;  %v587_v30 = vld [vmem:[#allocation2 + $0xc8] sm:$0xff]  ;;  %v578_v32 = vld [vmem:[#allocation2 + $0x80] sm:$0xff] }
  0x4f   : > { %379 = vperm.xlu1 %1792, %v342_v1   ;;  %375 = vperm.xlu0 %1790, %v341_v2   ;;  %v1601_v27 = vpack.c.bf16 %v573_v24, %v565_v22  ;;  %v1573_v31 = vpack.c.bf16 %v587_v30, %v579_v29  ;;  %v586_v33 = vld [vmem:[#allocation2 + $0xc0] sm:$0xff]  ;;  %v595_v35 = vld [vmem:[#allocation2 + $0x108] sm:$0xff] }
  0x50   : > { %1558 = vmatprep.subr.bf16.mxu0 %v1557_v10  ;;  %1570 = vmatprep.subr.bf16.mxu1 %v1569_v23  ;;  %v1575_v34 = vpack.c.bf16 %v586_v33, %v578_v32  ;;  %v603_v36 = vld [vmem:[#allocation2 + $0x148] sm:$0xff]  ;;  %v594_v38 = vld [vmem:[#allocation2 + $0x100] sm:$0xff]  ;;  %v581_v32 = vld [vmem:[#allocation2 + $0x98] sm:$0xff] }
  0x51   : > { %1560 = vmatpush3.bf16.msra.mxu0 %v1557_v10  ;;  %1572 = vmatpush1.bf16.msra.mxu1 %v1571_v28  ;;  %v1577_v37 = vpack.c.bf16 %v603_v36, %v595_v35  ;;  %v602_v39 = vld [vmem:[#allocation2 + $0x140] sm:$0xff]  ;;  %v611_v41 = vld [vmem:[#allocation2 + $0x188] sm:$0xff]  ;;  %v572_v28 = vld [vmem:[#allocation2 + $0x50] sm:$0xff] }
  0x52   : > { %1562 = vmatprep.subr.bf16.mxu0 %v1561_v14  ;;  %1574 = vmatprep.subr.bf16.mxu1 %v1573_v31  ;;  %v1579_v40 = vpack.c.bf16 %v602_v39, %v594_v38  ;;  %v619_v42 = vld [vmem:[#allocation2 + $0x1c8] sm:$0xff]  ;;  %v610_v44 = vld [vmem:[#allocation2 + $0x180] sm:$0xff]  ;;  %v589_v33 = vld [vmem:[#allocation2 + $0xd8] sm:$0xff] }
  0x53   : > { %1793 = vset.pattern.permute.xlu1 %v1934_v13  ;;  %1794 = vset.pattern.permute.xlu0 %v1934_v13  ;;  %v1581_v43 = vpack.c.bf16 %v619_v42, %v611_v41  ;;  %v618_v45 = vld [vmem:[#allocation2 + $0x1c0] sm:$0xff]  ;;  %v627_v46 = vld [vmem:[#allocation2 + $0x208] sm:$0xff]  ;;  %v1605_v38 = vpack.c.bf16 %v589_v33, %v581_v32  ;;  %v580_v39 = vld [vmem:[#allocation2 + $0x90] sm:$0xff] }
  0x54   : > { %403 = vperm.xlu1 %1793, %v341_v2   ;;  %407 = vperm.xlu0 %1794, %v342_v1   ;;  %v635_v47 = vld [vmem:[#allocation2 + $0x248] sm:$0xff]  ;;  %v1583_v48 = vpack.c.bf16 %v618_v45, %v610_v44  ;;  %v626_v50 = vld [vmem:[#allocation2 + $0x200] sm:$0xff]  ;;  %v366_v1 = vlaneseq  ;;  %v597_v41 = vld [vmem:[#allocation2 + $0x118] sm:$0xff] }
  0x55   : > { %1564 = vmatpush3.bf16.msra.mxu0 %v1561_v14  ;;  %1576 = vmatpush1.bf16.msra.mxu1 %v1575_v34  ;;  %v1585_v49 = vpack.c.bf16 %v635_v47, %v627_v46  ;;  %v634_v51 = vld [vmem:[#allocation2 + $0x240] sm:$0xff]  ;;  %v643_v52 = vld [vmem:[#allocation2 + $0x288] sm:$0xff]  ;;  %v605_v42 = vld [vmem:[#allocation2 + $0x158] sm:$0xff] }
  0x56   : > { %1566 = vmatprep.subr.bf16.mxu0 %v1565_v19  ;;  %1578 = vmatprep.subr.bf16.mxu1 %v1577_v37  ;;  %v651_v53 = vld [vmem:[#allocation2 + $0x2c8] sm:$0xff]  ;;  %v1587_v54 = vpack.c.bf16 %v634_v51, %v626_v50  ;;  %v642_v56 = vld [vmem:[#allocation2 + $0x280] sm:$0xff]  ;;  %v2124_v2 = vshrl.u32 %v366_v1, 7  ;;  %v1609_v46 = vpack.c.bf16 %v605_v42, %v597_v41  ;;  %v596_v47 = vld [vmem:[#allocation2 + $0x110] sm:$0xff] }
  0x57   : > { %v1589_v55 = vpack.c.bf16 %v651_v53, %v643_v52  ;;  %v650_v57 = vld [vmem:[#allocation2 + $0x2c0] sm:$0xff]  ;;  %v659_v58 = vld [vmem:[#allocation2 + $0x308] sm:$0xff]  ;;  %v613_v50 = vld [vmem:[#allocation2 + $0x198] sm:$0xff] }
  0x58   : > { %1795 = vset.pattern.permute.xlu1 %v1932_v3  ;;  %1797 = vset.pattern.permute.xlu0 %v1932_v3  ;;  %v667_v59 = vld [vmem:[#allocation2 + $0x348] sm:$0xff]  ;;  %v1591_v60 = vpack.c.bf16 %v650_v57, %v642_v56  ;;  %v658_v62 = vld [vmem:[#allocation2 + $0x300] sm:$0xff]  ;;  %v392_v3 = vsub.s32 1, %v2124_v2  ;;  %v368_v6 = vsub.s32 0, %v2124_v2  ;;  %v420_v9 = vsub.s32 2, %v2124_v2  ;;  %v621_v51 = vld [vmem:[#allocation2 + $0x1d8] sm:$0xff] }
  0x59   : > { %358 = vperm.xlu1 %1795, %v343_v15   ;;  %363 = vperm.xlu0 %1797, %v344_v16   ;;  %v1593_v61 = vpack.c.bf16 %v667_v59, %v659_v58  ;;  %v666_v63 = vld [vmem:[#allocation2 + $0x340] sm:$0xff]  ;;  %v1613_v58 = vpack.c.bf16 %v621_v51, %v613_v50  ;;  %v612_v59 = vld [vmem:[#allocation2 + $0x190] sm:$0xff]  ;;  %v569_v41 = vld [vmem:[#allocation2 + $0x38] sm:$0xff] }
  0x5a   : > { %1568 = vmatpush3.bf16.msra.mxu0 %v1565_v19  ;;  %1580 = vmatpush1.bf16.msra.mxu1 %v1579_v40  ;;  %v1595_v0 = vpack.c.bf16 %v666_v63, %v658_v62  ;;  %v2135_v24 = vld [vmem:[%s2412_s2] ss:$0 sm:$0xff]  ;;  %v588_v40 = vld [vmem:[#allocation2 + $0xd0] sm:$0xff]  ;;  %v629_v62 = vld [vmem:[#allocation2 + $0x218] sm:$0xff] }
  0x5b   : > { %1602 = vmatprep.subr.bf16.mxu0 %v1601_v27  ;;  %1582 = vmatprep.subr.bf16.mxu1 %v1581_v43  ;;  %v564_v27 = vld [vmem:[#allocation2 + $0x10] sm:$0xff]  ;;  %v1607_v44 = vpack.c.bf16 %v588_v40, %v580_v39  ;;  %v637_v63 = vld [vmem:[#allocation2 + $0x258] sm:$0xff]  ;;  %v674_v32 = vld [vmem:[#allocation2 + $0x380] sm:$0xff] }
  0x5c   : > { %v1603_v37 = vpack.c.bf16 %v572_v28, %v564_v27  ;;  %v675_v27 = vld [vmem:[#allocation2 + $0x388] sm:$0xff]  ;;  %v682_v33 = vld [vmem:[#allocation2 + $0x3c0] sm:$0xff]  ;;  %v568_v50 = vld [vmem:[#allocation2 + $0x30] sm:$0xff] }
  0x5d   : > { %1796 = vset.pattern.permute.xlu1 %v1933_v7  ;;  %1799 = vset.pattern.permute.xlu0 %v1934_v13  ;;  %v345_v7 = vld [vmem:[%s2411_s1] sm:$0x7]  ;;  %v683_v28 = vld [vmem:[#allocation2 + $0x3c8] sm:$0xff]  ;;  %v576_v51 = vld [vmem:[#allocation2 + $0x70] sm:$0xff] }
  0x5e   : > { %383 = vperm.xlu1 %1796, %v343_v15   ;;  %415 = vperm.xlu0 %1799, %v344_v16   ;;  %v393_v8 = vrot.slane %v345_v7, %v392_v3  ;;  %v369_v10 = vrot.slane %v345_v7, %v368_v6  ;;  %v1617_v6 = vpack.c.bf16 %v637_v63, %v629_v62  ;;  %v567_v39 = vld [vmem:[#allocation2 + $0x28] sm:$0xff] }
  0x5f   : > { %1584 = vmatpush1.bf16.msra.mxu1 %v1583_v48  ;;  %v604_v48 = vld [vmem:[#allocation2 + $0x150] sm:$0xff]  ;;  %v575_v40 = vld [vmem:[#allocation2 + $0x68] sm:$0xff] }
  0x60   : > { %1586 = vmatprep.subr.bf16.mxu1 %v1585_v49  ;;  %v1633_v42 = vpack.c.bf16 %v575_v40, %v567_v39  ;;  %v632_v40 = vld [vmem:[#allocation2 + $0x230] sm:$0xff] }
  0x62   : > { %387 = vperm.xlu1 %1796, %v344_v16  }
  0x63   : > { %1588 = vmatpush1.bf16.msra.mxu1 %v1587_v54 }
  0x64   : > { %1590 = vmatprep.subr.bf16.mxu1 %v1589_v55  ;;  %v1611_v55 = vpack.c.bf16 %v604_v48, %v596_v47  ;;  %v566_v47 = vld [vmem:[#allocation2 + $0x20] sm:$0xff] }
  0x66   : > { %1798 = vset.pattern.permute.xlu1 %v1934_v13 }
  0x67   : > { %411 = vperm.xlu1 %1798, %v343_v15   ;;  %1592 = vmatpush1.bf16.msra.mxu1 %v1591_v60  ;;  %v421_v15 = vrot.slane %v345_v7, %v420_v9  ;;  %v620_v60 = vld [vmem:[#allocation2 + $0x1d0] sm:$0xff] }
  0x68   : > { %1594 = vmatprep.subr.bf16.mxu1 %v1593_v61  ;;  %v1615_v3 = vpack.c.bf16 %v620_v60, %v612_v59  ;;  %v628_v7 = vld [vmem:[#allocation2 + $0x210] sm:$0xff]  ;;  %v1667_v59 = vpack.c.bf16 %v576_v51, %v568_v50  ;;  %v582_v60 = vld [vmem:[#allocation2 + $0xa0] sm:$0xff] }
  0x69   : > { %v636_v9 = vld [vmem:[#allocation2 + $0x250] sm:$0xff]  ;;  %v646_v51 = vld [vmem:[#allocation2 + $0x2a0] sm:$0xff] }
  0x6b   : > { %1596 = vmatpush1.bf16.msra.mxu1 %v1595_v0 }
  0xc9   : > { %v354_v4 = vpop.permute.xlu1 %353  ;;  %v349_v5 = vpop.permute.xlu0 %348 }
  0xca   : > { %v371_v16 = vmul.f32 %v369_v10, %v354_v4  ;;  %v370_v17 = vmul.f32 %v369_v10, %v349_v5 }
  0xce   : > { %v380_v11 = vpop.permute.xlu1 %379  ;;  %v376_v12 = vpop.permute.xlu0 %375 }
  0xcf   : > { %v395_v13 = vmul.f32 %v393_v8, %v380_v11  ;;  %v394_v14 = vmul.f32 %v393_v8, %v376_v12  ;;  %v645_v11 = vld [vmem:[#allocation2 + $0x298] sm:$0xff] }
  0xd1   : > { %v399_v20 = vadd.f32 %v395_v13, %v371_v16  ;;  %v398_v21 = vadd.f32 %v394_v14, %v370_v17  ;;  %v1619_v13 = vpack.c.bf16 %v636_v9, %v628_v7  ;;  %v644_v17 = vld [vmem:[#allocation2 + $0x290] sm:$0xff]  ;;  %v601_v7 = vld [vmem:[#allocation2 + $0x138] sm:$0xff] }
  0xd2   : > { %v609_v9 = vld [vmem:[#allocation2 + $0x178] sm:$0xff] }
  0xd3   : > { %v404_v18 = vpop.permute.xlu1 %403  ;;  %v408_v19 = vpop.permute.xlu0 %407 }
  0xd4   : > { %v422_v22 = vmul.f32 %v421_v15, %v404_v18  ;;  %v423_v23 = vmul.f32 %v421_v15, %v408_v19  ;;  %v652_v18 = vld [vmem:[#allocation2 + $0x2d0] sm:$0xff]  ;;  %v661_v19 = vld [vmem:[#allocation2 + $0x318] sm:$0xff] }
  0xd6   : > { %v426_v25 = vadd.f32 %v422_v22, %v398_v21  ;;  %v427_v26 = vadd.f32 %v423_v23, %v399_v20  ;;  %v669_v20 = vld [vmem:[#allocation2 + $0x358] sm:$0xff]  ;;  %v1623_v22 = vpack.c.bf16 %v652_v18, %v644_v17  ;;  %v600_v17 = vld [vmem:[#allocation2 + $0x130] sm:$0xff] }
  0xd7   : > { %v1625_v23 = vpack.c.bf16 %v669_v20, %v661_v19  ;;  %v608_v18 = vld [vmem:[#allocation2 + $0x170] sm:$0xff]  ;;  %v615_v19 = vld [vmem:[#allocation2 + $0x1a8] sm:$0xff] }
  0xd8   : > { %v438_v29 = vadd.f32 %v2135_v24, %v427_v26  ;;  %v359_v30 = vpop.permute.xlu1 %358  ;;  %v437_v31 = vadd.f32 %v2135_v24, %v426_v25  ;;  %v364_v34 = vpop.permute.xlu0 %363  ;;  %v660_v25 = vld [vmem:[#allocation2 + $0x310] sm:$0xff]  ;;  %v623_v20 = vld [vmem:[#allocation2 + $0x1e8] sm:$0xff] }
  0xd9   : > { %v373_v49 = vmul.f32 %v369_v10, %v364_v34  ;;  %v372_v56 = vmul.f32 %v369_v10, %v359_v30  ;;  %v653_v10 = vld [vmem:[#allocation2 + $0x2d8] sm:$0xff]  ;;  %v668_v26 = vld [vmem:[#allocation2 + $0x350] sm:$0xff]  ;;  %v1597_v30 = vpack.c.bf16 %v683_v28, %v675_v27 }
  0xda   : > { %v442_v35 = vmax.f32 %v438_v29, 0.0  ;;  %v441_v36 = vmax.f32 %v437_v31, 0.0  ;;  %v1621_v16 = vpack.c.bf16 %v653_v10, %v645_v11  ;;  %v677_v29 = vld [vmem:[#allocation2 + $0x398] sm:$0xff]  ;;  %v616_v28 = vld [vmem:[#allocation2 + $0x1b0] sm:$0xff] }
  0xdb   : > { %v685_v31 = vld [vmem:[#allocation2 + $0x3d8] sm:$0xff]  ;;  %1598 = vmatprep.subr.bf16.mxu1 %v1597_v30  ;;  %v631_v30 = vld [vmem:[#allocation2 + $0x228] sm:$0xff] }
  0xdc   : > { %1547 = vmatprep.mubr.msk.f32.mxu0 %vm460_vm0, %v441_v36  ;;  %v1629_v34 = vpack.c.bf16 %v685_v31, %v677_v29  ;;  %v676_v36 = vld [vmem:[#allocation2 + $0x390] sm:$0xff]  ;;  %v639_v31 = vld [vmem:[#allocation2 + $0x268] sm:$0xff] }
  0xdd   : > { %v384_v43 = vpop.permute.xlu1 %383  ;;  %1548 = vmatmul.mubr.msk.f32.vlgmr.msra.gmra.mrb[0].mxu0 %vm460_vm0, %v442_v35  ;;  %v416_v45 = vpop.permute.xlu0 %415  ;;  %v1599_v35 = vpack.c.bf16 %v682_v33, %v674_v32  ;;  %v624_v29 = vld [vmem:[#allocation2 + $0x1f0] sm:$0xff]  ;;  %v633_v32 = vld [vmem:[#allocation2 + $0x238] sm:$0xff] }
  0xde   : > { %1604 = vmatpush1.bf16.msra.mxu0 %v1603_v37  ;;  %v425_v54 = vmul.f32 %v421_v15, %v416_v45  ;;  %v396_v57 = vmul.f32 %v393_v8, %v384_v43  ;;  %v684_v37 = vld [vmem:[#allocation2 + $0x3d0] sm:$0xff]  ;;  %v577_v43 = vld [vmem:[#allocation2 + $0x78] sm:$0xff]  ;;  %v1935_v45 = vmov 0.0  }
  0xdf   : > { %1606 = vmatprep.subr.bf16.mxu0 %v1605_v38  ;;  %v1631_v38 = vpack.c.bf16 %v684_v37, %v676_v36  ;;  %1600 = vmatpush1.bf16.msra.mxu1 %v1599_v35  ;;  %v641_v33 = vld [vmem:[#allocation2 + $0x278] sm:$0xff]  ;;  %v1679_v35 = vpack.c.bf16 %v624_v29, %v616_v28  ;;  %v630_v36 = vld [vmem:[#allocation2 + $0x220] sm:$0xff] }
  0xe0   : > { %v400_v4 = vadd.f32 %v396_v57, %v372_v56  ;;  %754 = vmatprep.mubr.f32.mxu1 %v1935_v45  ;;  %1634 = vmatprep.subr.bf16.mxu1 %v1633_v42  ;;  %v585_v56 = vld [vmem:[#allocation2 + $0xb8] sm:$0xff]  ;;  %v638_v37 = vld [vmem:[#allocation2 + $0x260] sm:$0xff]  ;;  %v1681_v39 = vpack.c.bf16 %v641_v33, %v633_v32  ;;  %v647_v42 = vld [vmem:[#allocation2 + $0x2a8] sm:$0xff] }
  0xe1   : > { %v388_v52 = vpop.permute.xlu1 %387  ;;  %v593_v57 = vld [vmem:[#allocation2 + $0xf8] sm:$0xff] }
  0xe2   : > { %v397_v53 = vmul.f32 %v393_v8, %v388_v52  ;;  %1608 = vmatpush1.bf16.msra.mxu0 %v1607_v44  ;;  %v1665_v44 = vpack.c.bf16 %v577_v43, %v569_v41  ;;  %v640_v41 = vld [vmem:[#allocation2 + $0x270] sm:$0xff]  ;;  %v655_v43 = vld [vmem:[#allocation2 + $0x2e8] sm:$0xff] }
  0xe3   : > { %1610 = vmatprep.subr.bf16.mxu0 %v1609_v46  ;;  %v2150_v46 = vld [vmem:[%s2414_s4] ss:$0 sm:$0xff]  ;;  %v1683_v50 = vpack.c.bf16 %v640_v41, %v632_v40 }
  0xe4   : > { %v401_v61 = vadd.f32 %v397_v53, %v373_v49  ;;  %v574_v49 = vld [vmem:[#allocation2 + $0x60] sm:$0xff]  ;;  %v583_v53 = vld [vmem:[#allocation2 + $0xa8] sm:$0xff] }
  0xe6   : > { %v429_v0 = vadd.f32 %v425_v54, %v401_v61  ;;  %v412_v1 = vpop.permute.xlu1 %411  ;;  %1612 = vmatpush1.bf16.msra.mxu0 %v1611_v55  ;;  %v591_v55 = vld [vmem:[#allocation2 + $0xe8] sm:$0xff]  ;;  %v590_v61 = vld [vmem:[#allocation2 + $0xe0] sm:$0xff] }
  0xe7   : > { %v424_v5 = vmul.f32 %v421_v15, %v412_v1  ;;  %1614 = vmatprep.subr.bf16.mxu0 %v1613_v58  ;;  %v1635_v58 = vpack.c.bf16 %v574_v49, %v566_v47  ;;  %v592_v1 = vld [vmem:[#allocation2 + $0xf0] sm:$0xff]  ;;  %v1639_v11 = vpack.c.bf16 %v590_v61, %v582_v60  ;;  %v657_v47 = vld [vmem:[#allocation2 + $0x2f8] sm:$0xff]  ;;  %v1651_v49 = vpack.c.bf16 %v638_v37, %v630_v36  ;;  %v671_v60 = vld [vmem:[#allocation2 + $0x368] sm:$0xff] }
  0xe8   : > { %v440_v12 = vadd.f32 %v2135_v24, %v429_v0  ;;  %v584_v0 = vld [vmem:[#allocation2 + $0xb0] sm:$0xff]  ;;  %v665_v61 = vld [vmem:[#allocation2 + $0x338] sm:$0xff] }
  0xe9   : > { %v428_v8 = vadd.f32 %v424_v5, %v400_v4  ;;  %v1637_v4 = vpack.c.bf16 %v591_v55, %v583_v53  ;;  %v1669_v5 = vpack.c.bf16 %v593_v57, %v585_v56  ;;  %v1671_v10 = vpack.c.bf16 %v592_v1, %v584_v0  ;;  %v648_v56 = vld [vmem:[#allocation2 + $0x2b0] sm:$0xff] }
  0xea   : > { %1616 = vmatpush1.bf16.msra.mxu0 %v1615_v3  ;;  %v444_v21 = vmax.f32 %v440_v12, 0.0  ;;  %v599_v3 = vld [vmem:[#allocation2 + $0x128] sm:$0xff]  ;;  %v606_v12 = vld [vmem:[#allocation2 + $0x160] sm:$0xff]  ;;  %v656_v57 = vld [vmem:[#allocation2 + $0x2f0] sm:$0xff] }
  0xeb   : > { %v439_v14 = vadd.f32 %v2135_v24, %v428_v8  ;;  %1618 = vmatprep.subr.bf16.mxu0 %v1617_v6  ;;  %v1627_v24 = vpack.c.bf16 %v668_v26, %v660_v25  ;;  %v607_v6 = vld [vmem:[#allocation2 + $0x168] sm:$0xff]  ;;  %v598_v8 = vld [vmem:[#allocation2 + $0x120] sm:$0xff] }
  0xec   : > { %v614_v25 = vld [vmem:[#allocation2 + $0x1a0] sm:$0xff] }
  0xed   : > { %v443_v15 = vmax.f32 %v439_v14, 0.0  ;;  %v1641_v14 = vpack.c.bf16 %v607_v6, %v599_v3  ;;  %v622_v26 = vld [vmem:[#allocation2 + $0x1e0] sm:$0xff] }
  0xee   : > { %1620 = vmatpush1.bf16.msra.mxu0 %v1619_v13  ;;  %v670_v6 = vld [vmem:[#allocation2 + $0x360] sm:$0xff] }
  0xef   : > { %1550 = vmatprep.mubr.msk.f32.mxu0 %vm460_vm0, %v443_v15  ;;  %1622 = vmatprep.subr.bf16.mxu0 %v1621_v16  ;;  %v1673_v16 = vpack.c.bf16 %v609_v9, %v601_v7  ;;  %v617_v15 = vld [vmem:[#allocation2 + $0x1b8] sm:$0xff] }
  0xf0   : > { %1551 = vmatmul.mubr.msk.f32.gmra.mrb[2].mxu0 %vm460_vm0, %v444_v21  ;;  %v625_v21 = vld [vmem:[#allocation2 + $0x1f8] sm:$0xff] }
  0xf1   : > { %843 = vmatprep.mubr.f32.mxu0 %v1935_v45  ;;  %v1677_v27 = vpack.c.bf16 %v625_v21, %v617_v15  ;;  %v686_v21 = vld [vmem:[#allocation2 + $0x3e0] sm:$0xff] }
  0xf2   : > { %1624 = vmatpush1.bf16.msra.mxu0 %v1623_v22  ;;  %v1643_v22 = vpack.c.bf16 %v606_v12, %v598_v8  ;;  %v679_v8 = vld [vmem:[#allocation2 + $0x3a8] sm:$0xff] }
  0xf3   : > { %1626 = vmatprep.subr.bf16.mxu0 %v1625_v23  ;;  %v1675_v23 = vpack.c.bf16 %v608_v18, %v600_v17  ;;  %v687_v12 = vld [vmem:[#allocation2 + $0x3e8] sm:$0xff] }
  0xf6   : > { %1628 = vmatpush1.bf16.msra.mxu0 %v1627_v24  ;;  %v1645_v24 = vpack.c.bf16 %v623_v20, %v615_v19  ;;  %v678_v19 = vld [vmem:[#allocation2 + $0x3a0] sm:$0xff]  ;;  %v1661_v20 = vpack.c.bf16 %v687_v12, %v679_v8 }
  0xf7   : > { %1630 = vmatprep.subr.bf16.mxu0 %v1629_v34  ;;  %v1647_v34 = vpack.c.bf16 %v622_v26, %v614_v25  ;;  %v1663_v25 = vpack.c.bf16 %v686_v21, %v678_v19 }
  0xfa   : > { %1632 = vmatpush1.bf16.msra.mxu0 %v1631_v38  ;;  %v1649_v38 = vpack.c.bf16 %v639_v31, %v631_v30 }
  0xfb   : > { %1666 = vmatprep.subr.bf16.mxu0 %v1665_v44  ;;  %v649_v44 = vld [vmem:[#allocation2 + $0x2b8] sm:$0xff] }
  0xfc   : > { %v1685_v55 = vpack.c.bf16 %v657_v47, %v649_v44 }
 0x1b0   : > { %v1549_v48 = vpop.f32.mrb[0].mxu0 }
 0x1b1   : > { %v539_v52 = vpop.f32.mrb[1].mxu0  ;;  %v545_v62 = vadd.f32 %v1549_v48, %v2150_v46 }
 0x1b2   : > { %v540_v54 = vadd.f32 %v2150_v46, %v539_v52  ;;  %v654_v52 = vld [vmem:[#allocation2 + $0x2e0] sm:$0xff] }
 0x1b3   : > { %v2158_v13 = vmax.f32 %v545_v62, 0.0  ;;  %v673_v62 = vld [vmem:[#allocation2 + $0x378] sm:$0xff]  ;;  %v1655_v3 = vpack.c.bf16 %v654_v52, %v646_v51 }
 0x1b4   : > { %v2154_v63 = vmax.f32 %v540_v54, 0.0  ;;  %v1653_v54 = vpack.c.bf16 %v655_v43, %v647_v42  ;;  %v1689_v9 = vpack.c.bf16 %v673_v62, %v665_v61 }
 0x1b6   : > { %755 = vmatmul.mubr.f32.vlgmr.msra.gmra.mrb[0].mxu1 %v2154_v63  ;;  %844 = vmatmul.mubr.f32.vlgmr.msra.gmra.mrb[4].mxu0 %v2154_v63 }
 0x1b7   : > { %1636 = vmatpush1.bf16.msra.mxu1 %v1635_v58  ;;  %1668 = vmatpush1.bf16.msra.mxu0 %v1667_v59  ;;  %v663_v58 = vld [vmem:[#allocation2 + $0x328] sm:$0xff] }
 0x1b8   : > { %760 = vmatprep.mubr.f32.mxu1 %v1935_v45  ;;  %849 = vmatprep.mubr.f32.mxu0 %v1935_v45  ;;  %v1657_v7 = vpack.c.bf16 %v671_v60, %v663_v58  ;;  %v1058_v58 = vadd.s32 (!%p1508_p13), 16, %v2124_v2  ;;  %v1060_v60 = vstv (!%p1508_p13), %s1516_s17 }
 0x1b9   : > { %1638 = vmatprep.subr.bf16.mxu1 %v1637_v4  ;;  %1670 = vmatprep.subr.bf16.mxu0 %v1669_v5  ;;  %v1687_v4 = vpack.c.bf16 %v656_v57, %v648_v56  ;;  %v662_v5 = vld [vmem:[#allocation2 + $0x320] sm:$0xff]  ;;  %v1057_v57 = vadd.s32 (!%p1508_p13), 8, %v2124_v2  ;;  %v1061_v61 = vadd.s32 (!%p1508_p13), %v1060_v60, %v2124_v2 }
 0x1ba   : > { %761 = vmatmul.mubr.f32.gmra.mrb[2].mxu1 %v2158_v13  ;;  %850 = vmatmul.mubr.f32.gmra.mrb[6].mxu0 %v2158_v13  ;;  %v1659_v17 = vpack.c.bf16 %v670_v6, %v662_v5 }
 0x1bb   : > { %1640 = vmatpush1.bf16.msra.mxu1 %v1639_v11  ;;  %1672 = vmatpush1.bf16.msra.mxu0 %v1671_v10  ;;  %v664_v11 = vld [vmem:[#allocation2 + $0x330] sm:$0xff]  ;;  %v1062_v62 = vadd.s32 (!%p1508_p13), %v1060_v60, %v1057_v57  ;;  %vm1065_vm1 = vcmp.lt.s32.totalorder (!%p1508_p13), %v1061_v61, 80 }
 0x1bc   : > { %1642 = vmatprep.subr.bf16.mxu1 %v1641_v14  ;;  %1674 = vmatprep.subr.bf16.mxu0 %v1673_v16  ;;  %v672_v10 = vld [vmem:[#allocation2 + $0x370] sm:$0xff]  ;;  %v681_v14 = vld [vmem:[#allocation2 + $0x3b8] sm:$0xff] }
 0x1bd   : > { %766 = vmatprep.mubr.f32.mxu1 %v1935_v45  ;;  %855 = vmatprep.mubr.f32.mxu0 %v1935_v45  ;;  %v689_v16 = vld [vmem:[#allocation2 + $0x3f8] sm:$0xff]  ;;  %v1691_v18 = vpack.c.bf16 %v672_v10, %v664_v11  ;;  %vm1066_vm2 = vcmp.lt.s32.totalorder (!%p1508_p13), %v1062_v62, 80 }
 0x1be   : > { %v1693_v15 = vpack.c.bf16 %v689_v16, %v681_v14 }
 0x1bf   : > { %1644 = vmatpush1.bf16.msra.mxu1 %v1643_v22  ;;  %1676 = vmatpush1.bf16.msra.mxu0 %v1675_v23  ;;  %v680_v22 = vld [vmem:[#allocation2 + $0x3b0] sm:$0xff] }
 0x1c0   : > { %1646 = vmatprep.subr.bf16.mxu1 %v1645_v24  ;;  %1678 = vmatprep.subr.bf16.mxu0 %v1677_v27  ;;  %v688_v23 = vld [vmem:[#allocation2 + $0x3f0] sm:$0xff] }
 0x1c1   : > { %v1695_v26 = vpack.c.bf16 %v688_v23, %v680_v22 }
 0x1c3   : > { %1648 = vmatpush1.bf16.msra.mxu1 %v1647_v34  ;;  %1680 = vmatpush1.bf16.msra.mxu0 %v1679_v35  ;;  %v1552_v48 = vpop.f32.mrb[2].mxu0 }
 0x1c4   : > { %v549_v53 = vpop.f32.mrb[3].mxu0  ;;  %1650 = vmatprep.subr.bf16.mxu1 %v1649_v38  ;;  %1682 = vmatprep.subr.bf16.mxu0 %v1681_v39  ;;  %v555_v0 = vadd.f32 %v1552_v48, %v2150_v46 }
 0x1c5   : > { %v550_v59 = vadd.f32 %v2150_v46, %v549_v53 }
 0x1c6   : > { %v561_v46 = vmax.f32 %v555_v0, 0.0  ;;  %v1063_v0 = vadd.s32 (!%p1508_p13), %v1060_v60, %v1058_v58 }
 0x1c7   : > { %v560_v1 = vmax.f32 %v550_v59, 0.0  ;;  %1652 = vmatpush1.bf16.msra.mxu1 %v1651_v49  ;;  %1684 = vmatpush1.bf16.msra.mxu0 %v1683_v50  ;;  %v1059_v59 = vadd.s32 (!%p1508_p13), 24, %v2124_v2 }
 0x1c8   : > { %1654 = vmatprep.subr.bf16.mxu1 %v1653_v54  ;;  %1686 = vmatprep.subr.bf16.mxu0 %v1685_v55  ;;  %vm1067_vm3 = vcmp.lt.s32.totalorder (!%p1508_p13), %v1063_v0, 80 }
 0x1c9   : > { %767 = vmatmul.mubr.f32.gmra.mrb[4].mxu1 %v560_v1  ;;  %856 = vmatmul.mubr.f32.gmra.mrb[8].mxu0 %v560_v1 }
 0x1ca   : > { %772 = vmatprep.mubr.f32.mxu1 %v1935_v45  ;;  %861 = vmatprep.mubr.f32.mxu0 %v1935_v45 }
 0x1cb   : > { %1656 = vmatpush1.bf16.msra.mxu1 %v1655_v3  ;;  %1688 = vmatpush1.bf16.msra.mxu0 %v1687_v4  ;;  %v1936_v3 = vmov (!%p1508_p13), 1966171168  }
 0x1cc   : > { %1658 = vmatprep.subr.bf16.mxu1 %v1657_v7  ;;  %1690 = vmatprep.subr.bf16.mxu0 %v1689_v9  ;;  %v2258_v4 = vunpack.c.l.s4 (!%p1508_p13), %v1936_v3 }
 0x1cd   : > { %773 = vmatmul.mubr.f32.gmra.mrb[6].mxu1 %v561_v46  ;;  %862 = vmatmul.mubr.f32.gmra.mrb[10].mxu0 %v561_v46 }
 0x1ce   : > { %932 = vmatprep.mubr.f32.mxu1 %v1935_v45  ;;  %1021 = vmatprep.mubr.f32.mxu0 %v1935_v45 }
 0x1cf   : > { %1660 = vmatpush1.bf16.msra.mxu1 %v1659_v17  ;;  %1692 = vmatpush1.bf16.msra.mxu0 %v1691_v18 }
 0x1d0   : > { %1662 = vmatprep.subr.bf16.mxu1 %v1661_v20  ;;  %1694 = vmatprep.subr.bf16.mxu0 %v1693_v15 }
 0x1d3   : > { %1664 = vmatpush1.bf16.msra.mxu1 %v1663_v25  ;;  %1696 = vmatpush1.bf16.msra.mxu0 %v1695_v26 }
 0x1d6   : > { %933 = vmatmul.mubr.f32.vlgmr.msra.gmra.mrb[8].mxu1 %v2154_v63  ;;  %1022 = vmatmul.mubr.f32.vlgmr.msra.gmra.mrb[12].mxu0 %v2154_v63 }
 0x1d7   : > { %938 = vmatprep.mubr.f32.mxu1 %v1935_v45  ;;  %1027 = vmatprep.mubr.f32.mxu0 %v1935_v45 }
 0x1da   : > { %939 = vmatmul.mubr.f32.gmra.mrb[10].mxu1 %v2158_v13  ;;  %1028 = vmatmul.mubr.f32.gmra.mrb[14].mxu0 %v2158_v13 }
 0x1db   : > { %944 = vmatprep.mubr.f32.mxu1 %v1935_v45  ;;  %1033 = vmatprep.mubr.f32.mxu0 %v1935_v45 }
 0x1de   : > { %945 = vmatmul.mubr.f32.gmra.mrb[12].mxu1 %v560_v1  ;;  %1034 = vmatmul.mubr.f32.gmra.mrb[16].mxu0 %v560_v1  ;;  %v1064_v1 = vadd.s32 (!%p1508_p13), %v1060_v60, %v1059_v59 }
 0x1df   : > { %950 = vmatprep.mubr.f32.mxu1 %v1935_v45  ;;  %1039 = vmatprep.mubr.f32.mxu0 %v1935_v45 }
 0x1e0   : > { %vm1068_vm4 = vcmp.lt.s32.totalorder (!%p1508_p13), %v1064_v1, 80 }
 0x1e2   : > { %951 = vmatmul.mubr.f32.gmra.mrb[14].mxu1 %v561_v46  ;;  %1040 = vmatmul.mubr.f32.gmra.mrb[18].mxu0 %v561_v46 }
 0x289   : > { %v2187_v63 = vpop.f32.mrb[0].mxu1  ;;  %v2189_v24 = vpop.f32.mrb[4].mxu0 }
 0x28a   : > { %v2191_v13 = vpop.f32.mrb[1].mxu1  ;;  %v2193_v27 = vpop.f32.mrb[5].mxu0  ;;  %v1077_v5 = vsel (!%p1508_p13), %vm1065_vm1, %v2187_v63, -inf  ;;  %v1079_v7 = vsel (!%p1508_p13), %vm1065_vm1, %v2189_v24, -inf }
 0x28b   : > { %v1078_v6 = vsel (!%p1508_p13), %vm1065_vm1, %v2191_v13, -inf  ;;  %v1080_v9 = vsel (!%p1508_p13), %vm1065_vm1, %v2193_v27, -inf }
 0x28d   : > { %v2195_v28 = vpop.f32.mrb[2].mxu1  ;;  %v2197_v29 = vpop.f32.mrb[6].mxu0 }
 0x28e   : > { %v2199_v30 = vpop.f32.mrb[3].mxu1  ;;  %v2201_v45 = vpop.f32.mrb[7].mxu0  ;;  %v1085_v14 = vsel (!%p1508_p13), %vm1066_vm2, %v2195_v28, -inf  ;;  %v1087_v46 = vsel (!%p1508_p13), %vm1066_vm2, %v2197_v29, -inf }
 0x28f   : > { %v1086_v16 = vsel (!%p1508_p13), %vm1066_vm2, %v2199_v30, -inf  ;;  %v1088_v17 = vsel (!%p1508_p13), %vm1066_vm2, %v2201_v45, -inf }
 0x29c   : > { %v2203_v31 = vpop.f32.mrb[4].mxu1  ;;  %v2205_v32 = vpop.f32.mrb[8].mxu0 }
 0x29d   : > { %2452 = vst [vmem:[#allocation9_spill] sm:$0xff] %v2203_v31  ;;  %2453 = vst [vmem:[#allocation10_spill] sm:$0xff] %v2205_v32  ;;  %v2207_v33 = vpop.f32.mrb[5].mxu1  ;;  %v2209_v34 = vpop.f32.mrb[9].mxu0  ;;  %v1093_v21 = vsel (!%p1508_p13), %vm1067_vm3, %v2203_v31, -inf  ;;  %v1095_v23 = vsel (!%p1508_p13), %vm1067_vm3, %v2205_v32, -inf }
 0x29e   : > { %2454 = vst [vmem:[#allocation11_spill] sm:$0xff] %v2207_v33  ;;  %2455 = vst [vmem:[#allocation12_spill] sm:$0xff] %v2209_v34  ;;  %v1094_v22 = vsel (!%p1508_p13), %vm1067_vm3, %v2207_v33, -inf  ;;  %v1096_v25 = vsel (!%p1508_p13), %vm1067_vm3, %v2209_v34, -inf  ;;  %v1137_v34 = vmax.f32 (!%p1508_p13), %v1080_v9, %v1088_v17 }
 0x2a0   : > { %v2211_v35 = vpop.f32.mrb[6].mxu1  ;;  %v2213_v36 = vpop.f32.mrb[10].mxu0 }
 0x2a1   : > { %2456 = vst [vmem:[#allocation13_spill] sm:$0xff] %v2211_v35  ;;  %2457 = vst [vmem:[#allocation14_spill] sm:$0xff] %v2213_v36  ;;  %v2215_v37 = vpop.f32.mrb[7].mxu1  ;;  %v2217_v38 = vpop.f32.mrb[11].mxu0  ;;  %v1101_v60 = vsel (!%p1508_p13), %vm1068_vm4, %v2211_v35, -inf  ;;  %v1103_v62 = vsel (!%p1508_p13), %vm1068_vm4, %v2213_v36, -inf }
 0x2a2   : > { %2458 = vst [vmem:[#allocation15_spill] sm:$0xff] %v2215_v37  ;;  %2459 = vst [vmem:[#allocation16_spill] sm:$0xff] %v2217_v38  ;;  %v1102_v61 = vsel (!%p1508_p13), %vm1068_vm4, %v2215_v37, -inf  ;;  %v1104_v3 = vsel (!%p1508_p13), %vm1068_vm4, %v2217_v38, -inf  ;;  %v1119_v37 = vmax.f32 (!%p1508_p13), %v1078_v6, %v1086_v16 }
 0x2a9   : > { %v2219_v39 = vpop.f32.mrb[8].mxu1  ;;  %v2221_v40 = vpop.f32.mrb[12].mxu0 }
 0x2aa   : > { %2460 = vst [vmem:[#allocation17_spill] sm:$0xff] %v2221_v40  ;;  %v2223_v41 = vpop.f32.mrb[9].mxu1  ;;  %v2225_v42 = vpop.f32.mrb[13].mxu0  ;;  %v1081_v11 = vsel (!%p1508_p13), %vm1065_vm1, %v2219_v39, -inf  ;;  %v1083_v8 = vsel (!%p1508_p13), %vm1065_vm1, %v2221_v40, -inf }
 0x2ab   : > { %2461 = vst [vmem:[#allocation18_spill] sm:$0xff] %v2223_v41  ;;  %2462 = vst [vmem:[#allocation19_spill] sm:$0xff] %v2225_v42  ;;  %v1082_v10 = vsel (!%p1508_p13), %vm1065_vm1, %v2223_v41, -inf  ;;  %v1084_v12 = vsel (!%p1508_p13), %vm1065_vm1, %v2225_v42, -inf  ;;  %v1120_v42 = vmax.f32 (!%p1508_p13), %v1119_v37, %v1094_v22 }
 0x2ad   : > { %v2227_v43 = vpop.f32.mrb[10].mxu1  ;;  %v2229_v44 = vpop.f32.mrb[14].mxu0 }
 0x2ae   : > { %2463 = vst [vmem:[#allocation20_spill] sm:$0xff] %v2229_v44  ;;  %v2231_v47 = vpop.f32.mrb[11].mxu1  ;;  %v2233_v48 = vpop.f32.mrb[15].mxu0  ;;  %v1089_v18 = vsel (!%p1508_p13), %vm1066_vm2, %v2227_v43, -inf  ;;  %v1091_v20 = vsel (!%p1508_p13), %vm1066_vm2, %v2229_v44, -inf }
 0x2af   : > { %2464 = vst [vmem:[#allocation21_spill] sm:$0xff] %v2231_v47  ;;  %2465 = vst [vmem:[#allocation22_spill] sm:$0xff] %v2233_v48  ;;  %v1090_v19 = vsel (!%p1508_p13), %vm1066_vm2, %v2231_v47, -inf  ;;  %v1092_v15 = vsel (!%p1508_p13), %vm1066_vm2, %v2233_v48, -inf  ;;  %v1146_v36 = vmax.f32 (!%p1508_p13), %v1081_v11, %v1089_v18  ;;  %v1164_v38 = vmax.f32 (!%p1508_p13), %v1083_v8, %v1091_v20 }
 0x2b0   : > { %v1155_v33 = vmax.f32 (!%p1508_p13), %v1082_v10, %v1090_v19  ;;  %v1173_v31 = vmax.f32 (!%p1508_p13), %v1084_v12, %v1092_v15  ;;  %v1138_v48 = vmax.f32 (!%p1508_p13), %v1137_v34, %v1096_v25  ;;  %v1121_v47 = vmax.f32 (!%p1508_p13), %v1120_v42, %v1102_v61 }
 0x2b1   : > { %v2235_v49 = vpop.f32.mrb[12].mxu1  ;;  %v2237_v50 = vpop.f32.mrb[16].mxu0  ;;  %1053 = sbr.rel (%p1508_p13) target bundleno = 724 (0x2d4), region = 56 }
 0x2b2   : > { %2466 = vst [vmem:[#allocation23_spill] sm:$0xff] %v2235_v49  ;;  %2467 = vst [vmem:[#allocation24_spill] sm:$0xff] %v2237_v50  ;;  %v2239_v51 = vpop.f32.mrb[13].mxu1  ;;  %v2241_v52 = vpop.f32.mrb[17].mxu0  ;;  %v1097_v26 = vsel (!%p1508_p13), %vm1067_vm3, %v2235_v49, -inf  ;;  %v1099_v58 = vsel (!%p1508_p13), %vm1067_vm3, %v2237_v50, -inf  ;;  %v1128_v49 = vmax.f32 (!%p1508_p13), %v1079_v7, %v1087_v46 }
 0x2b3   : > { %2468 = vst [vmem:[#allocation25_spill] sm:$0xff] %v2239_v51  ;;  %2469 = vst [vmem:[#allocation26_spill] sm:$0xff] %v2241_v52  ;;  %v1098_v57 = vsel (!%p1508_p13), %vm1067_vm3, %v2239_v51, -inf  ;;  %v1100_v59 = vsel (!%p1508_p13), %vm1067_vm3, %v2241_v52, -inf  ;;  %v1110_v52 = vmax.f32 (!%p1508_p13), %v1077_v5, %v1085_v14  ;;  %v1147_v40 = vmax.f32 (!%p1508_p13), %v1146_v36, %v1097_v26 }
 0x2b4   : > { %v1156_v44 = vmax.f32 (!%p1508_p13), %v1155_v33, %v1098_v57  ;;  %v1165_v41 = vmax.f32 (!%p1508_p13), %v1164_v38, %v1099_v58 }
 0x2b5   : > { %v2243_v53 = vpop.f32.mrb[14].mxu1  ;;  %v2245_v54 = vpop.f32.mrb[18].mxu0  ;;  %v1111_v32 = vmax.f32 (!%p1508_p13), %v1110_v52, %v1093_v21  ;;  %v1122_v52 = vrot.slane (!%p1508_p13), %v1121_v47, 4 }
 0x2b6   : > { %2470 = vst [vmem:[#allocation27_spill] sm:$0xff] %v2243_v53  ;;  %2471 = vst [vmem:[#allocation28_spill] sm:$0xff] %v2245_v54  ;;  %v2247_v55 = vpop.f32.mrb[15].mxu1  ;;  %v2249_v56 = vpop.f32.mrb[19].mxu0  ;;  %v1105_v51 = vsel (!%p1508_p13), %vm1068_vm4, %v2243_v53, -inf  ;;  %v1107_v0 = vsel (!%p1508_p13), %vm1068_vm4, %v2245_v54, -inf  ;;  %v1129_v53 = vmax.f32 (!%p1508_p13), %v1128_v49, %v1095_v23  ;;  %v1174_v54 = vmax.f32 (!%p1508_p13), %v1173_v31, %v1100_v59 }
 0x2b7   : > { %2472 = vst [vmem:[#allocation29_spill] sm:$0xff] %v2247_v55  ;;  %2473 = vst [vmem:[#allocation30_spill] sm:$0xff] %v2249_v56  ;;  %v1106_v50 = vsel (!%p1508_p13), %vm1068_vm4, %v2247_v55, -inf  ;;  %v1108_v35 = vsel (!%p1508_p13), %vm1068_vm4, %v2249_v56, -inf  ;;  %v1112_v55 = vmax.f32 (!%p1508_p13), %v1111_v32, %v1101_v60  ;;  %v1139_v56 = vmax.f32 (!%p1508_p13), %v1138_v48, %v1104_v3 }
 0x2b8   : > { %v1130_v1 = vmax.f32 %v1129_v53, %v1103_v62  ;;  %v1148_v5 = vmax.f32 %v1147_v40, %v1105_v51  ;;  %v1157_v7 = vmax.f32 %v1156_v44, %v1106_v50  ;;  %v1166_v9 = vmax.f32 %v1165_v41, %v1107_v0 }
 0x2b9   : > { %v1113_v6 = vrot.slane %v1112_v55, 4  ;;  %v1175_v11 = vmax.f32 %v1174_v54, %v1108_v35  ;;  %v1140_v8 = vrot.slane %v1139_v56, 4  ;;  %v1123_v32 = vmax.f32 %v1121_v47, %v1122_v52 }
 0x2ba   : > { %v1131_v10 = vrot.slane %v1130_v1, 4  ;;  %v1149_v12 = vrot.slane %v1148_v5, 4  ;;  %v1158_v49 = vrot.slane %v1157_v7, 4  ;;  %v1167_v34 = vrot.slane %v1166_v9, 4 }
 0x2bb   : > { %v1114_v37 = vmax.f32 %v1112_v55, %v1113_v6  ;;  %v1176_v36 = vrot.slane %v1175_v11, 4  ;;  %v1141_v38 = vmax.f32 %v1139_v56, %v1140_v8  ;;  %v1124_v51 = vrot.slane %v1123_v32, 2 }
 0x2bc   : > { %v1132_v33 = vmax.f32 %v1130_v1, %v1131_v10  ;;  %v1150_v31 = vmax.f32 %v1148_v5, %v1149_v12  ;;  %v1159_v53 = vmax.f32 %v1157_v7, %v1158_v49  ;;  %v1168_v48 = vmax.f32 %v1166_v9, %v1167_v34 }
 0x2bd   : > { %v1115_v42 = vrot.slane %v1114_v37, 2  ;;  %v1177_v40 = vmax.f32 %v1175_v11, %v1176_v36  ;;  %v1142_v41 = vrot.slane %v1141_v38, 2  ;;  %v1125_v55 = vmax.f32 %v1123_v32, %v1124_v51 }
 0x2be   : > { %v1133_v44 = vrot.slane %v1132_v33, 2  ;;  %v1151_v35 = vrot.slane %v1150_v31, 2  ;;  %v1160_v54 = vrot.slane %v1159_v53, 2  ;;  %v1169_v14 = vrot.slane %v1168_v48, 2 }
 0x2bf   : > { %v1116_v50 = vmax.f32 %v1114_v37, %v1115_v42  ;;  %v1178_v16 = vrot.slane %v1177_v40, 2  ;;  %v1143_v17 = vmax.f32 %v1141_v38, %v1142_v41  ;;  %v1126_v15 = vrot.slane %v1125_v55, 1 }
 0x2c0   : > { %v1134_v46 = vmax.f32 %v1132_v33, %v1133_v44  ;;  %v1152_v18 = vmax.f32 %v1150_v31, %v1151_v35  ;;  %v1161_v19 = vmax.f32 %v1159_v53, %v1160_v54  ;;  %v1170_v56 = vmax.f32 %v1168_v48, %v1169_v14  ;;  %v1109_v33 = vld [vmem:[%s2092_s29] sm:$0xff] }
 0x2c1   : > { %v1117_v47 = vrot.slane %v1116_v50, 1  ;;  %v1179_v20 = vmax.f32 %v1177_v40, %v1178_v16  ;;  %v1144_v22 = vrot.slane %v1143_v17, 1  ;;  %v1127_v59 = vmax.f32 %v1125_v55, %v1126_v15 }
 0x2c2   : > { %v1135_v21 = vrot.slane %v1134_v46, 1  ;;  %v1153_v23 = vrot.slane %v1152_v18, 1  ;;  %v1162_v26 = vrot.slane %v1161_v19, 1  ;;  %v1171_v57 = vrot.slane %v1170_v56, 1 }
 0x2c3   : > { %v1118_v25 = vmax.f32 %v1116_v50, %v1117_v47  ;;  %v1180_v58 = vrot.slane %v1179_v20, 1  ;;  %v1145_v61 = vmax.f32 %v1143_v17, %v1144_v22  ;;  %v1196_v5 = vunpack.c.0.s8 %v2258_v4 }
 0x2c4   : > { %v1136_v60 = vmax.f32 %v1134_v46, %v1135_v21  ;;  %v1154_v62 = vmax.f32 %v1152_v18, %v1153_v23  ;;  %v1163_v3 = vmax.f32 %v1161_v19, %v1162_v26  ;;  %v1172_v0 = vmax.f32 %v1170_v56, %v1171_v57 }
 0x2c5   : > { %v1181_v1 = vmax.f32 %v1179_v20, %v1180_v58  ;;  %v1190_v6 = vcombine.low %v1118_v25, %v1127_v59  ;;  %v1199_v52 = vsub.s32 %v1196_v5, %v2124_v2 }
 0x2c6   : > { %v1191_v7 = vcombine.low %v1136_v60, %v1145_v61  ;;  %v1192_v9 = vcombine.low %v1154_v62, %v1163_v3 }
 0x2c7   : > { %v1193_v11 = vcombine.low %v1172_v0, %v1181_v1  ;;  %v1200_v10 = vrot.slane %v1190_v6, %v1199_v52 }
 0x2c8   : > { %v1207_v8 = vrot.slane %v1191_v7, %v1199_v52  ;;  %v1214_v12 = vrot.slane %v1192_v9, %v1199_v52 }
 0x2c9   : > { %v1221_v37 = vrot.slane %v1193_v11, %v1199_v52 }
 0x2ca   : > { %v1222_v49 = vcombine.low %v1200_v10, %v1207_v8 }
 0x2cb   : > { %v1223_v34 = vcombine.low %v1214_v12, %v1221_v37 }
 0x2cc   : > { %v1230_v36 = vrot.slane %v1222_v49, %v1199_v52 }
 0x2cd   : > { %v1237_v32 = vrot.slane %v1223_v34, %v1199_v52 }
 0x2cf   : > { %v1238_v38 = vcombine.low %v1230_v36, %v1237_v32 }
 0x2d1   : > { %v1240_v31 = vmax.f32 %v1109_v33, %v1238_v38 }
 0x2d3   : > { %1241 = vst [vmem:[%s2092_s29] sm:$0xff] %v1240_v31 }
 0x2d4 PF: > { %p1510_p0 = scmp.gt.s32.totalorder %s2185_s12, 80 }
 0x2d5   : > { %v1247_v4 = vmax.f32 (!%p1510_p0), %v2187_v63, %v2195_v28  ;;  %v1256_v42 = vmax.f32 (!%p1510_p0), %v2191_v13, %v2199_v30  ;;  %v1265_v53 = vmax.f32 (!%p1510_p0), %v2189_v24, %v2197_v29  ;;  %v1274_v48 = vmax.f32 (!%p1510_p0), %v2193_v27, %v2201_v45  ;;  %v2474_v51 = vld [vmem:[#allocation21_spill] sm:$0xff] (!%p1510_p0)  ;;  %v2475_v44 = vld [vmem:[#allocation18_spill] sm:$0xff] (!%p1510_p0)  ;;  %v2476_v35 = vld [vmem:[#allocation20_spill] sm:$0xff] (!%p1510_p0) }
 0x2d6   : > { %1245 = sbr.rel (%p1510_p0) target bundleno = 762 (0x2fa), region = 60  ;;  %v1283_v40 = vmax.f32 (!%p1510_p0), %v2219_v39, %v2227_v43  ;;  %v1292_v41 = vmax.f32 (!%p1510_p0), %v2475_v44, %v2474_v51  ;;  %v2477_v50 = vld [vmem:[#allocation17_spill] sm:$0xff] (!%p1510_p0)  ;;  %v2478_v14 = vld [vmem:[#allocation22_spill] sm:$0xff] (!%p1510_p0)  ;;  %v2479_v63 = vld [vmem:[#allocation19_spill] sm:$0xff] (!%p1510_p0) }
 0x2d7   : > { %v1301_v54 = vmax.f32 (!%p1510_p0), %v2477_v50, %v2476_v35  ;;  %v1310_v28 = vmax.f32 (!%p1510_p0), %v2479_v63, %v2478_v14  ;;  %v2480_v16 = vld [vmem:[#allocation9_spill] sm:$0xff] (!%p1510_p0)  ;;  %v2481_v30 = vld [vmem:[#allocation11_spill] sm:$0xff] (!%p1510_p0)  ;;  %v2482_v24 = vld [vmem:[#allocation10_spill] sm:$0xff] (!%p1510_p0) }
 0x2d8   : > { %v1248_v13 = vmax.f32 (!%p1510_p0), %v1247_v4, %v2480_v16  ;;  %v1257_v55 = vmax.f32 (!%p1510_p0), %v1256_v42, %v2481_v30  ;;  %v1266_v29 = vmax.f32 (!%p1510_p0), %v1265_v53, %v2482_v24  ;;  %v2483_v46 = vld [vmem:[#allocation12_spill] sm:$0xff] (!%p1510_p0)  ;;  %v2484_v45 = vld [vmem:[#allocation23_spill] sm:$0xff] (!%p1510_p0)  ;;  %v2485_v39 = vld [vmem:[#allocation25_spill] sm:$0xff] (!%p1510_p0) }
 0x2d9   : > { %v1275_v27 = vmax.f32 (!%p1510_p0), %v1274_v48, %v2483_v46  ;;  %v1284_v17 = vmax.f32 (!%p1510_p0), %v1283_v40, %v2484_v45  ;;  %v1293_v43 = vmax.f32 (!%p1510_p0), %v1292_v41, %v2485_v39  ;;  %v2486_v18 = vld [vmem:[#allocation24_spill] sm:$0xff] (!%p1510_p0)  ;;  %v2487_v19 = vld [vmem:[#allocation26_spill] sm:$0xff] (!%p1510_p0)  ;;  %v2488_v20 = vld [vmem:[#allocation13_spill] sm:$0xff] (!%p1510_p0) }
 0x2da   : > { %v1302_v47 = vmax.f32 (!%p1510_p0), %v1301_v54, %v2486_v18  ;;  %v1311_v56 = vmax.f32 (!%p1510_p0), %v1310_v28, %v2487_v19  ;;  %v1249_v15 = vmax.f32 (!%p1510_p0), %v1248_v13, %v2488_v20  ;;  %v2489_v21 = vld [vmem:[#allocation15_spill] sm:$0xff] (!%p1510_p0)  ;;  %v2490_v23 = vld [vmem:[#allocation14_spill] sm:$0xff] (!%p1510_p0)  ;;  %v2491_v26 = vld [vmem:[#allocation16_spill] sm:$0xff] (!%p1510_p0) }
 0x2db   : > { %v1258_v22 = vmax.f32 (!%p1510_p0), %v1257_v55, %v2489_v21  ;;  %v1267_v25 = vmax.f32 (!%p1510_p0), %v1266_v29, %v2490_v23  ;;  %v1276_v57 = vmax.f32 (!%p1510_p0), %v1275_v27, %v2491_v26  ;;  %v2492_v58 = vld [vmem:[#allocation27_spill] sm:$0xff] (!%p1510_p0)  ;;  %v2493_v60 = vld [vmem:[#allocation29_spill] sm:$0xff] (!%p1510_p0)  ;;  %v2494_v62 = vld [vmem:[#allocation28_spill] sm:$0xff] (!%p1510_p0) }
 0x2dc   : > { %v1285_v59 = vmax.f32 (!%p1510_p0), %v1284_v17, %v2492_v58  ;;  %v1294_v61 = vmax.f32 (!%p1510_p0), %v1293_v43, %v2493_v60  ;;  %v1303_v3 = vmax.f32 (!%p1510_p0), %v1302_v47, %v2494_v62  ;;  %v2495_v0 = vld [vmem:[#allocation30_spill] sm:$0xff] (!%p1510_p0)  ;;  %v1250_v5 = vrot.slane (!%p1510_p0), %v1249_v15, 4 }
 0x2dd   : > { %v1312_v1 = vmax.f32 %v1311_v56, %v2495_v0  ;;  %v1259_v6 = vrot.slane %v1258_v22, 4  ;;  %v1268_v7 = vrot.slane %v1267_v25, 4  ;;  %v1277_v9 = vrot.slane %v1276_v57, 4 }
 0x2de   : > { %v1286_v11 = vrot.slane %v1285_v59, 4  ;;  %v1295_v52 = vrot.slane %v1294_v61, 4  ;;  %v1304_v10 = vrot.slane %v1303_v3, 4  ;;  %v1251_v12 = vmax.f32 %v1249_v15, %v1250_v5 }
 0x2df   : > { %v1313_v8 = vrot.slane %v1312_v1, 4  ;;  %v1260_v37 = vmax.f32 %v1258_v22, %v1259_v6  ;;  %v1269_v49 = vmax.f32 %v1267_v25, %v1268_v7  ;;  %v1278_v34 = vmax.f32 %v1276_v57, %v1277_v9  ;;  %v1246_v6 = vld [vmem:[%s2092_s29] sm:$0xff] }
 0x2e0   : > { %v1287_v36 = vmax.f32 %v1285_v59, %v1286_v11  ;;  %v1296_v32 = vmax.f32 %v1294_v61, %v1295_v52  ;;  %v1305_v33 = vmax.f32 %v1303_v3, %v1304_v10  ;;  %v1252_v31 = vrot.slane %v1251_v12, 2 }
 0x2e1   : > { %v1314_v38 = vmax.f32 %v1312_v1, %v1313_v8  ;;  %v1261_v4 = vrot.slane %v1260_v37, 2  ;;  %v1270_v42 = vrot.slane %v1269_v49, 2  ;;  %v1279_v53 = vrot.slane %v1278_v34, 2 }
 0x2e2   : > { %v1288_v48 = vrot.slane %v1287_v36, 2  ;;  %v1297_v40 = vrot.slane %v1296_v32, 2  ;;  %v1306_v51 = vrot.slane %v1305_v33, 2  ;;  %v1253_v41 = vmax.f32 %v1251_v12, %v1252_v31 }
 0x2e3   : > { %v1315_v44 = vrot.slane %v1314_v38, 2  ;;  %v1262_v35 = vmax.f32 %v1260_v37, %v1261_v4  ;;  %v1271_v50 = vmax.f32 %v1269_v49, %v1270_v42  ;;  %v1280_v54 = vmax.f32 %v1278_v34, %v1279_v53 }
 0x2e4   : > { %v1289_v14 = vmax.f32 %v1287_v36, %v1288_v48  ;;  %v1298_v63 = vmax.f32 %v1296_v32, %v1297_v40  ;;  %v1307_v28 = vmax.f32 %v1305_v33, %v1306_v51  ;;  %v1254_v13 = vrot.slane %v1253_v41, 1 }
 0x2e5   : > { %v1316_v16 = vmax.f32 %v1314_v38, %v1315_v44  ;;  %v1263_v30 = vrot.slane %v1262_v35, 1  ;;  %v1272_v55 = vrot.slane %v1271_v50, 1  ;;  %v1281_v24 = vrot.slane %v1280_v54, 1 }
 0x2e6   : > { %v1290_v29 = vrot.slane %v1289_v14, 1  ;;  %v1299_v46 = vrot.slane %v1298_v63, 1  ;;  %v1308_v27 = vrot.slane %v1307_v28, 1  ;;  %v1255_v17 = vmax.f32 %v1253_v41, %v1254_v13 }
 0x2e7   : > { %v1317_v45 = vrot.slane %v1316_v16, 1  ;;  %v1264_v39 = vmax.f32 %v1262_v35, %v1263_v30  ;;  %v1273_v43 = vmax.f32 %v1271_v50, %v1272_v55  ;;  %v1282_v18 = vmax.f32 %v1280_v54, %v1281_v24 }
 0x2e8   : > { %v1291_v47 = vmax.f32 %v1289_v14, %v1290_v29  ;;  %v1300_v19 = vmax.f32 %v1298_v63, %v1299_v46  ;;  %v1309_v56 = vmax.f32 %v1307_v28, %v1308_v27  ;;  %v1937_v15 = vmov 1966171168  }
 0x2e9   : > { %v1318_v20 = vmax.f32 %v1316_v16, %v1317_v45  ;;  %v1332_v21 = vunpack.c.l.s4 %v1937_v15  ;;  %v1327_v22 = vcombine.low %v1255_v17, %v1264_v39  ;;  %v1328_v23 = vcombine.low %v1273_v43, %v1282_v18 }
 0x2ea   : > { %v1329_v25 = vcombine.low %v1291_v47, %v1300_v19 }
 0x2eb   : > { %v1330_v26 = vcombine.low %v1309_v56, %v1318_v20  ;;  %v1333_v57 = vunpack.c.0.s8 %v1332_v21 }
 0x2ed   : > { %v1336_v58 = vsub.s32 %v1333_v57, %v2124_v2 }
 0x2ef   : > { %v1337_v59 = vrot.slane %v1327_v22, %v1336_v58  ;;  %v1344_v60 = vrot.slane %v1328_v23, %v1336_v58  ;;  %v1351_v61 = vrot.slane %v1329_v25, %v1336_v58  ;;  %v1358_v62 = vrot.slane %v1330_v26, %v1336_v58 }
 0x2f1   : > { %v1359_v3 = vcombine.low %v1337_v59, %v1344_v60  ;;  %v1360_v0 = vcombine.low %v1351_v61, %v1358_v62 }
 0x2f3   : > { %v1367_v1 = vrot.slane %v1359_v3, %v1336_v58  ;;  %v1374_v5 = vrot.slane %v1360_v0, %v1336_v58 }
 0x2f5   : > { %v1375_v7 = vcombine.low %v1367_v1, %v1374_v5 }
 0x2f7   : > { %v1377_v9 = vmax.f32 %v1246_v6, %v1375_v7 }
 0x2f9   : > { %1378 = vst [vmem:[%s2092_s29] sm:$0xff] %v1377_v9 }
 0x2fa PF: > { %s1518_s24 = sshll.u32 %s1914_s25, 7  ;;  %s1396_s19 = sshll.u32 %s2092_s29, 4  ;;  %s1397_s19 = int_to_ptr.vmem [resolvable:$true] %s1396_s19 }
 0x2fb   : > { %s2360_s14 = scalar_lea.hbm %s2416_s6, %s1518_s24  ;;  %s1380_s20 = scalar_lea.sflag [#allocation4], %s311_s8 }
 0x2fc   : > { %s1828_s13 = scalar_lea.vmem %s1397_s19, 128  ;;  %p2496_p5 = scmp.ne.s32.totalorder %s2444_s10, 0 }
 0x2fd   : > { %p1829_p2 = scmp.ne.s32.totalorder %s1397_s19, %s1828_s13  ;;  %s1938_s18 = smov [#allocation5]  }
 0x2fe   : > { %s1832_s30 = sshll.u32 %s1938_s18, 4  ;;  %s1833_s30 = int_to_ptr.vmem [resolvable:$false] %s1832_s30 }
 0x2ff   : > { %p1830_p6 = pnand %p1829_p2, %p2496_p5  ;;  %s1834_s17 = scalar_lea.vmem %s1833_s30, 256 }
 0x300   : > { %p1835_p8 = scmp.lt.s32.totalorder %s1397_s19, %s1833_s30  ;;  %p1836_p11 = scmp.lt.s32.totalorder %s1834_s17, %s1828_s13 }
 0x301   : > { %p1831_p7 = pneg %p1830_p6 }
 0x302   : > { %p1837_p12 = por %p1836_p11, %p1835_p8 }
 0x304   : > { %p1838_p1 = pnand %p1837_p12, %p1831_p7 }
 0x306   : > { %1841 = shalt.err (!%p1838_p1)
}
 0x307   : > { %s1842_s25 = scalar_lea.hbm %s2360_s14, 128  ;;  %s1846_s12 = scalar_lea.hbm %s2416_s6, 256 }
 0x308   : > { %p1843_p4 = scmp.ne.s32.totalorder %s2360_s14, %s1842_s25  ;;  %p1847_p10 = scmp.lt.u32.totalorder %s2360_s14, %s2416_s6 }
 0x309   : > { %p1848_p13 = scmp.lt.u32.totalorder %s1846_s12, %s1842_s25  ;;  %p1850_p2 = scmp.lt.u32.totalorder %s1842_s25, %s2360_s14 }
 0x30a   : > { %p1844_p3 = pnand %p1843_p4, %p2496_p5 }
 0x30b   : > { %p1849_p0 = por %p1848_p13, %p1847_p10 }
 0x30c   : > { %p1845_p9 = pneg %p1844_p3 }
 0x30d   : > { %p1851_p6 = por %p1850_p2, %p1849_p0 }
 0x30f   : > { %p1852_p7 = pnand %p1851_p6, %p1845_p9 }
 0x311   : > { %1855 = shalt.err (!%p1852_p7)
}
 0x312   : > { %1702 = dma.vmem_to_hbm [thread:$0]  (%p2496_p5), %s1397_s19, 128, %s2360_s14, %s1380_s20  }
 0x313 PF: > { %p1714_p8 = scmp.ge.s32.totalorder %s1926_s28, 2  ;;  %s1408_s16 = sand.u32 1, %s1898_s21  }
 0x314   : > { %p2497_p11 = scmp.ne.s32.totalorder %s2446_s11, 0  ;;  %s1409_s13 = scalar_lea.sflag [#allocation4], %s1408_s16 }
 0x316   : > { %p1709_p12 = pnand %p1714_p8, %p2497_p11 }
 0x318   : > { %1893 = dma.done.wait (!%p1709_p12), %s1409_s13, 128  }
 0x319   : > { %1895 = vsyncadd (!%p1709_p12), %s1409_s13, 4294967168  ;;  %s20_s28 = sadd.s32 1, %s1926_s28   ;;  %s2498_s10 = sld [smem:[#allocation8_spill]] }
 0x31a   : > { %p17_p1 = scmp.ge.s32.totalorder %s20_s28, 8   ;;  %s2499_s21 = smov %s1902_s22 }
 0x31b   : > { %s2500_s22 = smov %s1906_s23  ;;  %s2501_s23 = smov %s2051_s15 }
 0x31c   : > { %s2502_s24 = smov %s1918_s26  ;;  %s2503_s25 = smov %s1922_s27 }
 0x31d   : > { %s2504_s26 = smov %s2507_s7  ;;  %19 = sbr.rel (!%p17_p1) target bundleno = 6 (0x6), region = 96 }
 0x31f   : > { %s2505_s27 = smov %s2498_s10 }
 0x324   :  { %1414 = vsyncpa [#allocation3], 1 }
 0x325   :  { %1416 = vsyncpa [#allocation3 + $0x1], 1 }
 0x326   :  { %1417 = vsyncpa [#allocation4], 1 }
 0x327   :  { %1419 = vsyncpa [#allocation4 + $0x1], 1 }

</bundles_post_ra>
